<compile_context>
chip_gen: v7x
topology: tpu7x:2x2x1
jax: 0.10.0
libtpu: 0.0.40
codegen_flags: <defaults>
</compile_context>

<pallas_src>
import functools

import jax
import jax.numpy as jnp
from jax.experimental import pallas as pl
from jax.experimental.pallas import tpu as pltpu


def _make_freq_bands(n_freqs: int, log_sampling: bool):
    """Replicates the PyTorch __init__ freq_bands construction (static floats)."""
    if n_freqs <= 0:
        return ()
    if n_freqs == 1:
        return (1.0,)
    if log_sampling:
        # 2.0 ** linspace(0, n_freqs-1, n_freqs) -> exact powers of two
        return tuple(2.0 ** float(i) for i in range(n_freqs))
    lo, hi = 1.0, 2.0 ** (n_freqs - 1)
    step = (hi - lo) / (n_freqs - 1)
    return tuple(lo + step * i for i in range(n_freqs))


def _freq_embed_kernel(x_ref, o_ref, *, freq_bands, include_input, use_sin,
                       use_cos, use_double_angle, reseed_every):
    """x_ref: (D, TB) lane-dense tile (batch on lanes).
       o_ref: (n_parts, D, TB) tile; each part written with one full-slab store."""
    x = x_ref[...].astype(jnp.float32)   # compute in f32 (v5e has no bf16 VPU/EUP)

    part = 0
    if include_input:
        o_ref[part, :, :] = x.astype(o_ref.dtype)
        part += 1

    if not freq_bands:
        return

    if use_double_angle:
        # log-sampled bands are exact powers of two: seed sin/cos on the EUP
        # every `reseed_every` octaves, double-angle the rest on the VPU.
        s = None
        c = None
        for k, freq in enumerate(freq_bands):
            if k % reseed_every == 0:
                xf = x * jnp.float32(freq)
                s = jnp.sin(xf)            # EUP
                c = jnp.cos(xf)            # EUP
            else:
                # sin(2a) = 2 sin a cos a ; cos(2a) = 1 - 2 sin^2 a   (VPU only)
                s, c = 2.0 * s * c, 1.0 - 2.0 * s * s
            if use_sin:
                o_ref[part, :, :] = s.astype(o_ref.dtype)
                part += 1
            if use_cos:
                o_ref[part, :, :] = c.astype(o_ref.dtype)
                part += 1
    else:
        for freq in freq_bands:
            xf = x * jnp.float32(freq)
            if use_sin:
                o_ref[part, :, :] = jnp.sin(xf).astype(o_ref.dtype)
                part += 1
            if use_cos:
                o_ref[part, :, :] = jnp.cos(xf).astype(o_ref.dtype)
                part += 1


class FreqEmbedder:
    """JAX/Pallas port of arcnerf FreqEmbedder (periodic_fns fixed to sin/cos)."""

    def __init__(self, input_dim, n_freqs, log_sampling=True, include_input=True,
                 use_sin=True, use_cos=True, use_double_angle=True, reseed_every=4):
        self.input_dim = input_dim
        self.n_freqs = n_freqs
        self.include_input = include_input
        self.use_sin = use_sin
        self.use_cos = use_cos
        self.n_fns = int(use_sin) + int(use_cos)
        self.n_parts = int(include_input) + n_freqs * self.n_fns
        self.out_dim = self.n_parts * input_dim
        assert self.out_dim > 0, (
            "FreqEmbedder produces an empty embedding "
            "(include_input=False and no periodic terms)")
        self.freq_bands = _make_freq_bands(n_freqs, log_sampling)
        # Double-angle recurrence only valid for power-of-two (log-sampled) bands.
        self.use_double_angle = bool(use_double_angle and log_sampling
                                     and n_freqs > 1 and self.n_fns > 0)
        self.reseed_every = max(1, int(reseed_every))

    def get_output_dim(self):
        return self.out_dim

    def __call__(self, x, *, block_b=4096, channel_major_output=False):
        B, D = x.shape
        assert D == self.input_dim, f"Input shape should be (B, {self.input_dim})"
        out_dtype = x.dtype

        # Feature-major / lane-dense layout: batch maps to the 128-lane axis.
        # (x is tiny relative to the 21x larger output, so this transpose is cheap.)
        x_t = x.T  # (D, B)

        if B <= block_b:
            bb = B          # single full-extent block: always layout-legal
        else:
            bb = block_b    # multiple of 128; ragged last block handled by Pallas
        grid = (pl.cdiv(B, bb),)

        kernel = functools.partial(
            _freq_embed_kernel,
            freq_bands=self.freq_bands,
            include_input=self.include_input,
            use_sin=self.use_sin,
            use_cos=self.use_cos,
            use_double_angle=self.use_double_angle,
            reseed_every=self.reseed_every,
        )

        if self.use_double_angle:
            n_seeds = -(-self.n_freqs // self.reseed_every)
            n_trans_per_elem = 2 * n_seeds
        else:
            n_trans_per_elem = self.n_fns * self.n_freqs
        itemsize = jnp.dtype(out_dtype).itemsize
        cost = pl.CostEstimate(
            flops=int(6 * B * D * max(self.n_freqs, 1)),
            transcendentals=int(B * D * n_trans_per_elem),
            bytes_accessed=int(B * D * jnp.dtype(x.dtype).itemsize
                               + B * self.out_dim * itemsize),
        )

        # Per-step VMEM (double-buffered in+out) at defaults:
        #   2 * (8*bb + n_parts*8*bb) * 4 B  ~ 5.8 MB for bb=4096, n_parts=21,
        # comfortably inside the 32 MiB scoped default on v5e/v6e/v7x.
        out3 = pl.pallas_call(
            kernel,
            out_shape=jax.ShapeDtypeStruct((self.n_parts, D, B), out_dtype),
            grid_spec=pltpu.PrefetchScalarGridSpec(
                num_scalar_prefetch=0,
                grid=grid,
                in_specs=[pl.BlockSpec((D, bb), lambda i: (0, i))],
                out_specs=pl.BlockSpec((self.n_parts, D, bb),
                                       lambda i: (0, 0, i)),
            ),
            compiler_params=pltpu.CompilerParams(
                dimension_semantics=("parallel",)),
            cost_estimate=cost,
        )(x_t)

        # (n_parts, D, B) -> (out_dim, B): contiguous reshape, no data movement.
        out_cm = out3.reshape(self.out_dim, B)
        if channel_major_output:
            # Channel-major output for consumers that can fuse the transpose
            # into their own dot_general (avoids an HBM transpose pass).
            return out_cm
        return out_cm.T  # (B, out_dim), matching the PyTorch channel order


def _reference(x, freq_bands, include_input, use_sin=True, use_cos=True):
    parts = []
    if include_input:
        parts.append(x)
    for f in freq_bands:
        xf = x * jnp.float32(f)
        if use_sin:
            parts.append(jnp.sin(xf))
        if use_cos:
            parts.append(jnp.cos(xf))
    return jnp.concatenate(parts, axis=-1) if len(parts) > 1 else parts[0]


if __name__ == "__main__":
    key = jax.random.PRNGKey(0)
    B, input_dim, n_freqs = 16, 3, 10  # out_dim = 3 + 3*10*2 = 63
    x = jax.random.normal(key, (B, input_dim), dtype=jnp.float32)

    # 1) Exact path (per-band sin/cos, numerically faithful to the PyTorch module).
    emb_exact = FreqEmbedder(input_dim=input_dim, n_freqs=n_freqs,
                             log_sampling=True, include_input=True,
                             use_double_angle=False)
    y_exact = jax.block_until_ready(emb_exact(x))
    assert y_exact.shape == (B, emb_exact.get_output_dim()), y_exact.shape

    y_ref = _reference(x, emb_exact.freq_bands, include_input=True)
    assert jnp.allclose(y_exact, y_ref, atol=1e-5, rtol=1e-5), \
        "exact path mismatch vs reference"

    # 2) Default fast path: double-angle recurrence, reseeded every 4 octaves
    #    (relaxed tolerance covers the documented recurrence / f32 range-reduction drift).
    emb_fast = FreqEmbedder(input_dim=input_dim, n_freqs=n_freqs,
                            log_sampling=True, include_input=True)
    y_fast = jax.block_until_ready(emb_fast(x))
    assert y_fast.shape == (B, emb_fast.get_output_dim()), y_fast.shape
    assert jnp.allclose(y_fast, y_ref, atol=2e-3, rtol=2e-3), \
        "fast (double-angle) path mismatch vs reference"

    print("KERNEL_OK")
</pallas_src>

<mosaic_0001>
module attributes {stable_mosaic.version = 11 : i64} {
  func.func @_freq_embed_kernel(%arg0: i32, %arg1: memref<3x16xf32, #tpu.memory_space<vmem>>, %arg2: memref<21x3x16xf32, #tpu.memory_space<vmem>>) attributes {dimension_semantics = [#tpu.dimension_semantics<parallel>], iteration_bounds = array<i64: 1>, scalar_prefetch = 0 : i64, scratch_operands = 0 : i64, tpu.core_type = #tpu.core_type<tc>, window_params = [{transform_indices = @transform_0, window_bounds = array<i64: 3, 16>}, {transform_indices = @transform_1, window_bounds = array<i64: 21, 3, 16>}]} {
    %c0 = arith.constant 0 : index
    %c0_0 = arith.constant 0 : index
    %0 = vector.load %arg1[%c0, %c0_0] : memref<3x16xf32, #tpu.memory_space<vmem>>, vector<3x16xf32>
    %c0_1 = arith.constant 0 : index
    %c0_2 = arith.constant 0 : index
    %c0_3 = arith.constant 0 : index
    %1 = vector.load %arg2[%c0_1, %c0_2, %c0_3] : memref<21x3x16xf32, #tpu.memory_space<vmem>>, vector<1x3x16xf32>
    %2 = vector.shape_cast %1 : vector<1x3x16xf32> to vector<3x16xf32>
    %3 = vector.shape_cast %0 : vector<3x16xf32> to vector<1x3x16xf32>
    tpu.vector_store %arg2[%c0_1, %c0_2, %c0_3], %3 {strides = array<i32>} : memref<21x3x16xf32, #tpu.memory_space<vmem>>, vector<1x3x16xf32>,
    %cst = arith.constant 1.000000e+00 : f32
    %4 = vector.broadcast %cst : f32 to vector<3x16xf32>
    %5 = arith.mulf %0, %4 : vector<3x16xf32>
    %6 = math.sin %5 : vector<3x16xf32>
    %c1 = arith.constant 1 : index
    %c0_4 = arith.constant 0 : index
    %c0_5 = arith.constant 0 : index
    %7 = vector.load %arg2[%c1, %c0_4, %c0_5] : memref<21x3x16xf32, #tpu.memory_space<vmem>>, vector<1x3x16xf32>
    %8 = vector.shape_cast %7 : vector<1x3x16xf32> to vector<3x16xf32>
    %9 = vector.shape_cast %6 : vector<3x16xf32> to vector<1x3x16xf32>
    tpu.vector_store %arg2[%c1, %c0_4, %c0_5], %9 {strides = array<i32>} : memref<21x3x16xf32, #tpu.memory_space<vmem>>, vector<1x3x16xf32>,
    %10 = math.cos %5 : vector<3x16xf32>
    %c2 = arith.constant 2 : index
    %c0_6 = arith.constant 0 : index
    %c0_7 = arith.constant 0 : index
    %11 = vector.load %arg2[%c2, %c0_6, %c0_7] : memref<21x3x16xf32, #tpu.memory_space<vmem>>, vector<1x3x16xf32>
    %12 = vector.shape_cast %11 : vector<1x3x16xf32> to vector<3x16xf32>
    %13 = vector.shape_cast %10 : vector<3x16xf32> to vector<1x3x16xf32>
    tpu.vector_store %arg2[%c2, %c0_6, %c0_7], %13 {strides = array<i32>} : memref<21x3x16xf32, #tpu.memory_space<vmem>>, vector<1x3x16xf32>,
    %cst_8 = arith.constant 2.000000e+00 : f32
    %14 = vector.broadcast %cst_8 : f32 to vector<3x16xf32>
    %15 = arith.mulf %0, %14 : vector<3x16xf32>
    %16 = math.sin %15 : vector<3x16xf32>
    %c3 = arith.constant 3 : index
    %c0_9 = arith.constant 0 : index
    %c0_10 = arith.constant 0 : index
    %17 = vector.load %arg2[%c3, %c0_9, %c0_10] : memref<21x3x16xf32, #tpu.memory_space<vmem>>, vector<1x3x16xf32>
    %18 = vector.shape_cast %17 : vector<1x3x16xf32> to vector<3x16xf32>
    %19 = vector.shape_cast %16 : vector<3x16xf32> to vector<1x3x16xf32>
    tpu.vector_store %arg2[%c3, %c0_9, %c0_10], %19 {strides = array<i32>} : memref<21x3x16xf32, #tpu.memory_space<vmem>>, vector<1x3x16xf32>,
    %20 = math.cos %15 : vector<3x16xf32>
    %c4 = arith.constant 4 : index
    %c0_11 = arith.constant 0 : index
    %c0_12 = arith.constant 0 : index
    %21 = vector.load %arg2[%c4, %c0_11, %c0_12] : memref<21x3x16xf32, #tpu.memory_space<vmem>>, vector<1x3x16xf32>
    %22 = vector.shape_cast %21 : vector<1x3x16xf32> to vector<3x16xf32>
    %23 = vector.shape_cast %20 : vector<3x16xf32> to vector<1x3x16xf32>
    tpu.vector_store %arg2[%c4, %c0_11, %c0_12], %23 {strides = array<i32>} : memref<21x3x16xf32, #tpu.memory_space<vmem>>, vector<1x3x16xf32>,
    %cst_13 = arith.constant 4.000000e+00 : f32
    %24 = vector.broadcast %cst_13 : f32 to vector<3x16xf32>
    %25 = arith.mulf %0, %24 : vector<3x16xf32>
    %26 = math.sin %25 : vector<3x16xf32>
    %c5 = arith.constant 5 : index
    %c0_14 = arith.constant 0 : index
    %c0_15 = arith.constant 0 : index
    %27 = vector.load %arg2[%c5, %c0_14, %c0_15] : memref<21x3x16xf32, #tpu.memory_space<vmem>>, vector<1x3x16xf32>
    %28 = vector.shape_cast %27 : vector<1x3x16xf32> to vector<3x16xf32>
    %29 = vector.shape_cast %26 : vector<3x16xf32> to vector<1x3x16xf32>
    tpu.vector_store %arg2[%c5, %c0_14, %c0_15], %29 {strides = array<i32>} : memref<21x3x16xf32, #tpu.memory_space<vmem>>, vector<1x3x16xf32>,
    %30 = math.cos %25 : vector<3x16xf32>
    %c6 = arith.constant 6 : index
    %c0_16 = arith.constant 0 : index
    %c0_17 = arith.constant 0 : index
    %31 = vector.load %arg2[%c6, %c0_16, %c0_17] : memref<21x3x16xf32, #tpu.memory_space<vmem>>, vector<1x3x16xf32>
    %32 = vector.shape_cast %31 : vector<1x3x16xf32> to vector<3x16xf32>
    %33 = vector.shape_cast %30 : vector<3x16xf32> to vector<1x3x16xf32>
    tpu.vector_store %arg2[%c6, %c0_16, %c0_17], %33 {strides = array<i32>} : memref<21x3x16xf32, #tpu.memory_space<vmem>>, vector<1x3x16xf32>,
    %cst_18 = arith.constant 8.000000e+00 : f32
    %34 = vector.broadcast %cst_18 : f32 to vector<3x16xf32>
    %35 = arith.mulf %0, %34 : vector<3x16xf32>
    %36 = math.sin %35 : vector<3x16xf32>
    %c7 = arith.constant 7 : index
    %c0_19 = arith.constant 0 : index
    %c0_20 = arith.constant 0 : index
    %37 = vector.load %arg2[%c7, %c0_19, %c0_20] : memref<21x3x16xf32, #tpu.memory_space<vmem>>, vector<1x3x16xf32>
    %38 = vector.shape_cast %37 : vector<1x3x16xf32> to vector<3x16xf32>
    %39 = vector.shape_cast %36 : vector<3x16xf32> to vector<1x3x16xf32>
    tpu.vector_store %arg2[%c7, %c0_19, %c0_20], %39 {strides = array<i32>} : memref<21x3x16xf32, #tpu.memory_space<vmem>>, vector<1x3x16xf32>,
    %40 = math.cos %35 : vector<3x16xf32>
    %c8 = arith.constant 8 : index
    %c0_21 = arith.constant 0 : index
    %c0_22 = arith.constant 0 : index
    %41 = vector.load %arg2[%c8, %c0_21, %c0_22] : memref<21x3x16xf32, #tpu.memory_space<vmem>>, vector<1x3x16xf32>
    %42 = vector.shape_cast %41 : vector<1x3x16xf32> to vector<3x16xf32>
    %43 = vector.shape_cast %40 : vector<3x16xf32> to vector<1x3x16xf32>
    tpu.vector_store %arg2[%c8, %c0_21, %c0_22], %43 {strides = array<i32>} : memref<21x3x16xf32, #tpu.memory_space<vmem>>, vector<1x3x16xf32>,
    %cst_23 = arith.constant 1.600000e+01 : f32
    %44 = vector.broadcast %cst_23 : f32 to vector<3x16xf32>
    %45 = arith.mulf %0, %44 : vector<3x16xf32>
    %46 = math.sin %45 : vector<3x16xf32>
    %c9 = arith.constant 9 : index
    %c0_24 = arith.constant 0 : index
    %c0_25 = arith.constant 0 : index
    %47 = vector.load %arg2[%c9, %c0_24, %c0_25] : memref<21x3x16xf32, #tpu.memory_space<vmem>>, vector<1x3x16xf32>
    %48 = vector.shape_cast %47 : vector<1x3x16xf32> to vector<3x16xf32>
    %49 = vector.shape_cast %46 : vector<3x16xf32> to vector<1x3x16xf32>
    tpu.vector_store %arg2[%c9, %c0_24, %c0_25], %49 {strides = array<i32>} : memref<21x3x16xf32, #tpu.memory_space<vmem>>, vector<1x3x16xf32>,
    %50 = math.cos %45 : vector<3x16xf32>
    %c10 = arith.constant 10 : index
    %c0_26 = arith.constant 0 : index
    %c0_27 = arith.constant 0 : index
    %51 = vector.load %arg2[%c10, %c0_26, %c0_27] : memref<21x3x16xf32, #tpu.memory_space<vmem>>, vector<1x3x16xf32>
    %52 = vector.shape_cast %51 : vector<1x3x16xf32> to vector<3x16xf32>
    %53 = vector.shape_cast %50 : vector<3x16xf32> to vector<1x3x16xf32>
    tpu.vector_store %arg2[%c10, %c0_26, %c0_27], %53 {strides = array<i32>} : memref<21x3x16xf32, #tpu.memory_space<vmem>>, vector<1x3x16xf32>,
    %cst_28 = arith.constant 3.200000e+01 : f32
    %54 = vector.broadcast %cst_28 : f32 to vector<3x16xf32>
    %55 = arith.mulf %0, %54 : vector<3x16xf32>
    %56 = math.sin %55 : vector<3x16xf32>
    %c11 = arith.constant 11 : index
    %c0_29 = arith.constant 0 : index
    %c0_30 = arith.constant 0 : index
    %57 = vector.load %arg2[%c11, %c0_29, %c0_30] : memref<21x3x16xf32, #tpu.memory_space<vmem>>, vector<1x3x16xf32>
    %58 = vector.shape_cast %57 : vector<1x3x16xf32> to vector<3x16xf32>
    %59 = vector.shape_cast %56 : vector<3x16xf32> to vector<1x3x16xf32>
    tpu.vector_store %arg2[%c11, %c0_29, %c0_30], %59 {strides = array<i32>} : memref<21x3x16xf32, #tpu.memory_space<vmem>>, vector<1x3x16xf32>,
    %60 = math.cos %55 : vector<3x16xf32>
    %c12 = arith.constant 12 : index
    %c0_31 = arith.constant 0 : index
    %c0_32 = arith.constant 0 : index
    %61 = vector.load %arg2[%c12, %c0_31, %c0_32] : memref<21x3x16xf32, #tpu.memory_space<vmem>>, vector<1x3x16xf32>
    %62 = vector.shape_cast %61 : vector<1x3x16xf32> to vector<3x16xf32>
    %63 = vector.shape_cast %60 : vector<3x16xf32> to vector<1x3x16xf32>
    tpu.vector_store %arg2[%c12, %c0_31, %c0_32], %63 {strides = array<i32>} : memref<21x3x16xf32, #tpu.memory_space<vmem>>, vector<1x3x16xf32>,
    %cst_33 = arith.constant 6.400000e+01 : f32
    %64 = vector.broadcast %cst_33 : f32 to vector<3x16xf32>
    %65 = arith.mulf %0, %64 : vector<3x16xf32>
    %66 = math.sin %65 : vector<3x16xf32>
    %c13 = arith.constant 13 : index
    %c0_34 = arith.constant 0 : index
    %c0_35 = arith.constant 0 : index
    %67 = vector.load %arg2[%c13, %c0_34, %c0_35] : memref<21x3x16xf32, #tpu.memory_space<vmem>>, vector<1x3x16xf32>
    %68 = vector.shape_cast %67 : vector<1x3x16xf32> to vector<3x16xf32>
    %69 = vector.shape_cast %66 : vector<3x16xf32> to vector<1x3x16xf32>
    tpu.vector_store %arg2[%c13, %c0_34, %c0_35], %69 {strides = array<i32>} : memref<21x3x16xf32, #tpu.memory_space<vmem>>, vector<1x3x16xf32>,
    %70 = math.cos %65 : vector<3x16xf32>
    %c14 = arith.constant 14 : index
    %c0_36 = arith.constant 0 : index
    %c0_37 = arith.constant 0 : index
    %71 = vector.load %arg2[%c14, %c0_36, %c0_37] : memref<21x3x16xf32, #tpu.memory_space<vmem>>, vector<1x3x16xf32>
    %72 = vector.shape_cast %71 : vector<1x3x16xf32> to vector<3x16xf32>
    %73 = vector.shape_cast %70 : vector<3x16xf32> to vector<1x3x16xf32>
    tpu.vector_store %arg2[%c14, %c0_36, %c0_37], %73 {strides = array<i32>} : memref<21x3x16xf32, #tpu.memory_space<vmem>>, vector<1x3x16xf32>,
    %cst_38 = arith.constant 1.280000e+02 : f32
    %74 = vector.broadcast %cst_38 : f32 to vector<3x16xf32>
    %75 = arith.mulf %0, %74 : vector<3x16xf32>
    %76 = math.sin %75 : vector<3x16xf32>
    %c15 = arith.constant 15 : index
    %c0_39 = arith.constant 0 : index
    %c0_40 = arith.constant 0 : index
    %77 = vector.load %arg2[%c15, %c0_39, %c0_40] : memref<21x3x16xf32, #tpu.memory_space<vmem>>, vector<1x3x16xf32>
    %78 = vector.shape_cast %77 : vector<1x3x16xf32> to vector<3x16xf32>
    %79 = vector.shape_cast %76 : vector<3x16xf32> to vector<1x3x16xf32>
    tpu.vector_store %arg2[%c15, %c0_39, %c0_40], %79 {strides = array<i32>} : memref<21x3x16xf32, #tpu.memory_space<vmem>>, vector<1x3x16xf32>,
    %80 = math.cos %75 : vector<3x16xf32>
    %c16 = arith.constant 16 : index
    %c0_41 = arith.constant 0 : index
    %c0_42 = arith.constant 0 : index
    %81 = vector.load %arg2[%c16, %c0_41, %c0_42] : memref<21x3x16xf32, #tpu.memory_space<vmem>>, vector<1x3x16xf32>
    %82 = vector.shape_cast %81 : vector<1x3x16xf32> to vector<3x16xf32>
    %83 = vector.shape_cast %80 : vector<3x16xf32> to vector<1x3x16xf32>
    tpu.vector_store %arg2[%c16, %c0_41, %c0_42], %83 {strides = array<i32>} : memref<21x3x16xf32, #tpu.memory_space<vmem>>, vector<1x3x16xf32>,
    %cst_43 = arith.constant 2.560000e+02 : f32
    %84 = vector.broadcast %cst_43 : f32 to vector<3x16xf32>
    %85 = arith.mulf %0, %84 : vector<3x16xf32>
    %86 = math.sin %85 : vector<3x16xf32>
    %c17 = arith.constant 17 : index
    %c0_44 = arith.constant 0 : index
    %c0_45 = arith.constant 0 : index
    %87 = vector.load %arg2[%c17, %c0_44, %c0_45] : memref<21x3x16xf32, #tpu.memory_space<vmem>>, vector<1x3x16xf32>
    %88 = vector.shape_cast %87 : vector<1x3x16xf32> to vector<3x16xf32>
    %89 = vector.shape_cast %86 : vector<3x16xf32> to vector<1x3x16xf32>
    tpu.vector_store %arg2[%c17, %c0_44, %c0_45], %89 {strides = array<i32>} : memref<21x3x16xf32, #tpu.memory_space<vmem>>, vector<1x3x16xf32>,
    %90 = math.cos %85 : vector<3x16xf32>
    %c18 = arith.constant 18 : index
    %c0_46 = arith.constant 0 : index
    %c0_47 = arith.constant 0 : index
    %91 = vector.load %arg2[%c18, %c0_46, %c0_47] : memref<21x3x16xf32, #tpu.memory_space<vmem>>, vector<1x3x16xf32>
    %92 = vector.shape_cast %91 : vector<1x3x16xf32> to vector<3x16xf32>
    %93 = vector.shape_cast %90 : vector<3x16xf32> to vector<1x3x16xf32>
    tpu.vector_store %arg2[%c18, %c0_46, %c0_47], %93 {strides = array<i32>} : memref<21x3x16xf32, #tpu.memory_space<vmem>>, vector<1x3x16xf32>,
    %cst_48 = arith.constant 5.120000e+02 : f32
    %94 = vector.broadcast %cst_48 : f32 to vector<3x16xf32>
    %95 = arith.mulf %0, %94 : vector<3x16xf32>
    %96 = math.sin %95 : vector<3x16xf32>
    %c19 = arith.constant 19 : index
    %c0_49 = arith.constant 0 : index
    %c0_50 = arith.constant 0 : index
    %97 = vector.load %arg2[%c19, %c0_49, %c0_50] : memref<21x3x16xf32, #tpu.memory_space<vmem>>, vector<1x3x16xf32>
    %98 = vector.shape_cast %97 : vector<1x3x16xf32> to vector<3x16xf32>
    %99 = vector.shape_cast %96 : vector<3x16xf32> to vector<1x3x16xf32>
    tpu.vector_store %arg2[%c19, %c0_49, %c0_50], %99 {strides = array<i32>} : memref<21x3x16xf32, #tpu.memory_space<vmem>>, vector<1x3x16xf32>,
    %100 = math.cos %95 : vector<3x16xf32>
    %c20 = arith.constant 20 : index
    %c0_51 = arith.constant 0 : index
    %c0_52 = arith.constant 0 : index
    %101 = vector.load %arg2[%c20, %c0_51, %c0_52] : memref<21x3x16xf32, #tpu.memory_space<vmem>>, vector<1x3x16xf32>
    %102 = vector.shape_cast %101 : vector<1x3x16xf32> to vector<3x16xf32>
    %103 = vector.shape_cast %100 : vector<3x16xf32> to vector<1x3x16xf32>
    tpu.vector_store %arg2[%c20, %c0_51, %c0_52], %103 {strides = array<i32>} : memref<21x3x16xf32, #tpu.memory_space<vmem>>, vector<1x3x16xf32>,
    return
  }
  func.func @transform_0(%arg0: i32) -> (i32, i32) {
    %c0_i32 = arith.constant 0 : i32
    %c0_i32_0 = arith.constant 0 : i32
    return %c0_i32, %arg0 : i32, i32
  }
  func.func @transform_1(%arg0: i32) -> (i32, i32, i32) {
    %c0_i32 = arith.constant 0 : i32
    %c0_i32_0 = arith.constant 0 : i32
    %c0_i32_1 = arith.constant 0 : i32
    return %c0_i32, %c0_i32_0, %arg0 : i32, i32, i32
  }
}

</mosaic_0001>

<bundles_post_ra>
// kernel: tpu_custom_call.1
= control target key start
LH: loop header
LB: loop body
LE: loop exit
PB: predicated region body
PF: predicated region fallthrough
CT: control target
= control target key end

     0   :  { %6 = vsyncpa [#allocation3], 0  ;;  %s2358_s6 = smov [#allocation2]   ;;  %s3369_s0 = inlined_call_operand.hbm [shape: f32[3,16], index: 0, kind: input, shape index: {}]   ;;  %s3370_s1 = inlined_call_operand.vmem [shape: f32[21,3,16], index: 1, kind: output, shape index: {}]  }
   0x1   :  { %s13_s7 = sshll.u32 %s2358_s6, 4  ;;  %s2334_s10 = scalar_lea.hbm %s3369_s0, 64  ;;  %s14_s7 = int_to_ptr.vmem [resolvable:$true] %s13_s7 }
   0x2   :  { %p2335_p0 = scmp.ne.s32.totalorder %s3369_s0, %s2334_s10  ;;  %p2338_p1 = scmp.lt.u32.totalorder %s2334_s10, %s3369_s0 }
   0x4   :  { %p2340_p2 = pnand %p2338_p1, %p2335_p0 }
   0x6   :  { %2343 = shalt.err (!%p2340_p2)
}
   0x7   :  { %s2344_s15 = scalar_lea.vmem %s14_s7, 64  ;;  %p2349_p4 = scmp.lt.s32.totalorder %s14_s7, %s14_s7 }
   0x8   :  { %p2345_p3 = scmp.ne.s32.totalorder %s14_s7, %s2344_s15  ;;  %p2350_p5 = scmp.lt.s32.totalorder %s2344_s15, %s2344_s15 }
   0xa   :  { %p2351_p6 = por %p2350_p5, %p2349_p4 }
   0xc   :  { %p2352_p7 = pnand %p2351_p6, %p2345_p3 }
   0xe   :  { %2355 = shalt.err (!%p2352_p7)
}
   0xf   :  { %16 = dma.hbm_to_vmem [thread:$0]  %s3369_s0, 64, %s14_s7, [#allocation3]  }
  0x10   :  { %2356 = dma.done.wait [#allocation3], 64  }
  0x11   :  { %2357 = vsyncadd [#allocation3], 4294967232  ;;  %vm21_vm0 = vcmask 124928   ;;  %v2387_v0 = vld [vmem:[#allocation2] sm:$0x7] }
  0x12   :  { %22 = vst.msk [vmem:[%s3370_s1] sm:$0x7] %vm21_vm0, %v2387_v0  ;;  %v23_v1 = vand.u32 2147483647, %v2387_v0  ;;  %v26_v2 = vand.u32 2139095040, %v2387_v0  ;;  %v2397_v3 = vmul.f32 2.0, %v2387_v0 }
  0x13   :  { %v2400_v4 = vmul.f32 4.0, %v2387_v0  ;;  %v2359_v26 = vmov 683565275   ;;  %v2360_v28 = vmov 2475754826   ;;  %vm25_vm14 = vcmp.lt.s32.totalorder %v2387_v0, 0 }
  0x14   :  { %v27_v5 = vshrl.u32 %v26_v2, 23  ;;  %v30_v6 = vand.u32 8388607, %v23_v1  ;;  %v235_v7 = vand.u32 2147483647, %v2397_v3  ;;  %v238_v8 = vand.u32 2139095040, %v2397_v3 }
  0x15   :  { %v450_v12 = vand.u32 2139095040, %v2400_v4  ;;  %v2361_v30 = vmov 2131351028   ;;  %v2362_v32 = vmov 2102212464  }
  0x16   :  { %v2147_v9 = vadd.s32 4294967169, %v27_v5  ;;  %v239_v10 = vshrl.u32 %v238_v8, 23  ;;  %v242_v11 = vand.u32 8388607, %v235_v7  ;;  %v31_v14 = vor.u32 8388608, %v30_v6 }
  0x17   :  { %v451_v17 = vshrl.u32 %v450_v12, 23  ;;  %v2363_v34 = vmov 920167782   ;;  %v2364_v41 = vmov 1326507024  }
  0x18   :  { %v33_v13 = vadd.s32 1, %v2147_v9  ;;  %v2157_v15 = vadd.s32 4294967169, %v239_v10  ;;  %v243_v16 = vor.u32 8388608, %v242_v11  ;;  %v2409_v22 = vshll.u32 %v31_v14, 8 }
  0x19   :  { %v2413_v24 = vadd.s32 4294967169, %v451_v17  ;;  %vm2493_vm15 = vcmp.le.f32.partialorder %v23_v1, 0.7853982 }
  0x1a   :  { %vm34_vm1 = vcmp.gt.s32.totalorder %v33_v13, 0  ;;  %v245_v19 = vadd.s32 1, %v2157_v15  ;;  %v2411_v23 = vshll.u32 %v243_v16, 8 }
  0x1b   :  { %v35_v18 = vsel %vm34_vm1, %v33_v13, 0 }
  0x1c   :  { %v36_v20 = vshrl.u32 %v35_v18, 5  ;;  %v37_v21 = vand.u32 31, %v35_v18  ;;  %vm246_vm2 = vcmp.gt.s32.totalorder %v245_v19, 0 }
  0x1d   :  { %v247_v46 = vsel %vm246_vm2, %v245_v19, 0  ;;  %vm237_vm2 = vcmp.lt.s32.totalorder %v2397_v3, 0 }
  0x1e   :  { %v38_v25 = vsub.s32 32, %v37_v21  ;;  %v40_v27 = vshll.u32 %v2359_v26, %v37_v21  ;;  %v43_v29 = vshll.u32 %v2360_v28, %v37_v21  ;;  %v46_v31 = vshll.u32 %v2361_v30, %v37_v21 }
  0x1f   :  { %v49_v33 = vshll.u32 %v2362_v32, %v37_v21  ;;  %v52_v35 = vshll.u32 %v2363_v34, %v37_v21  ;;  %vm55_vm3 = vcmp.lt.s32.totalorder %v36_v20, 1  ;;  %vm56_vm4 = vcmp.lt.s32.totalorder %v36_v20, 2 }
  0x20   :  { %v39_v36 = vshrl.u32 %v2359_v26, %v38_v25  ;;  %v41_v37 = vshrl.u32 %v2360_v28, %v38_v25  ;;  %v44_v38 = vshrl.u32 %v2361_v30, %v38_v25  ;;  %v47_v39 = vshrl.u32 %v2362_v32, %v38_v25 }
  0x21   :  { %v50_v40 = vshrl.u32 %v2363_v34, %v38_v25  ;;  %v53_v42 = vshrl.u32 %v2364_v41, %v38_v25  ;;  %vm57_vm5 = vcmp.lt.s32.totalorder %v36_v20, 3  ;;  %vm58_vm6 = vcmp.lt.s32.totalorder %v36_v20, 4 }
  0x22   :  { %v42_v43 = vor.u32 %v41_v37, %v40_v27  ;;  %v45_v44 = vor.u32 %v44_v38, %v43_v29  ;;  %v48_v45 = vor.u32 %v47_v39, %v46_v31  ;;  %v248_v49 = vshrl.u32 %v247_v46, 5 }
  0x23   :  { %v51_v47 = vor.u32 %v50_v40, %v49_v33  ;;  %v54_v48 = vor.u32 %v53_v42, %v52_v35  ;;  %v249_v50 = vand.u32 31, %v247_v46  ;;  %v457_v29 = vadd.s32 1, %v2413_v24 }
  0x24   :  { %v59_v51 = vsel %vm55_vm3, %v39_v36, %v42_v43  ;;  %v60_v52 = vsel %vm58_vm6, %v48_v45, 2102212464  ;;  %v63_v53 = vsel %vm55_vm3, %v42_v43, %v45_v44  ;;  %v67_v54 = vsel %vm55_vm3, %v45_v44, %v48_v45 }
  0x25   :  { %v61_v55 = vsel %vm57_vm5, %v45_v44, %v60_v52  ;;  %v64_v56 = vsel %vm58_vm6, %v51_v47, 920167782  ;;  %v68_v57 = vsel %vm58_vm6, %v54_v48, 1326507024  ;;  %v250_v58 = vsub.s32 32, %v249_v50 }
  0x26   :  { %v62_v59 = vsel %vm56_vm4, %v59_v51, %v61_v55  ;;  %v65_v60 = vsel %vm57_vm5, %v48_v45, %v64_v56  ;;  %v69_v61 = vsel %vm57_vm5, %v51_v47, %v68_v57  ;;  %v252_v62 = vshll.u32 %v2359_v26, %v249_v50 }
  0x27   :  { %v66_v63 = vsel %vm56_vm4, %v63_v53, %v65_v60  ;;  %v70_v2 = vsel %vm56_vm4, %v67_v54, %v69_v61  ;;  %v78_v5 = vmul.u32 %v2409_v22, %v62_v59  ;;  %v251_v6 = vshrl.u32 %v2359_v26, %v250_v58 }
  0x28   :  { %v2440_v8 = vmul.u32.u64.low %v2409_v22, %v70_v2  ;;  %v2441_v9 = vmul.u32.u64.high %v2409_v22, %v70_v2, %v2440_v8  ;;  %v2444_v10 = vmul.u32.u64.low %v2409_v22, %v66_v63  ;;  %v2445_v11 = vmul.u32.u64.high %v2409_v22, %v66_v63, %v2444_v10 }
  0x29   :  { %v253_v12 = vshrl.u32 %v2360_v28, %v250_v58  ;;  %v255_v13 = vshll.u32 %v2360_v28, %v249_v50  ;;  %v256_v14 = vshrl.u32 %v2361_v30, %v250_v58  ;;  %v258_v15 = vshll.u32 %v2361_v30, %v249_v50 }
  0x2a   :  { %v259_v16 = vshrl.u32 %v2362_v32, %v250_v58  ;;  %v261_v17 = vshll.u32 %v2362_v32, %v249_v50  ;;  %v262_v18 = vshrl.u32 %v2363_v34, %v250_v58  ;;  %v264_v19 = vshll.u32 %v2363_v34, %v249_v50 }
  0x2b   :  { %v254_v20 = vor.u32 %v253_v12, %v252_v62  ;;  %v257_v21 = vor.u32 %v256_v14, %v255_v13  ;;  %v265_v22 = vshrl.u32 %v2364_v41, %v250_v58  ;;  %vm267_vm7 = vcmp.lt.s32.totalorder %v248_v49, 1 }
  0x2c   :  { %vm80_vm8 = vc.u32 %v2441_v9, %v2444_v10  ;;  %v81_v25 = vadd.s32 1, %v2445_v11  ;;  %v260_v27 = vor.u32 %v259_v16, %v258_v15  ;;  %v263_v31 = vor.u32 %v262_v18, %v261_v17 }
  0x2d   :  { %v266_v33 = vor.u32 %v265_v22, %v264_v19  ;;  %vm268_vm9 = vcmp.lt.s32.totalorder %v248_v49, 2  ;;  %vm269_vm10 = vcmp.lt.s32.totalorder %v248_v49, 3  ;;  %vm270_vm11 = vcmp.lt.s32.totalorder %v248_v49, 4 }
  0x2e   :  { %v82_v35 = vsel %vm80_vm8, %v81_v25, %v2445_v11  ;;  %v271_v36 = vsel %vm267_vm7, %v251_v6, %v254_v20  ;;  %v275_v37 = vsel %vm267_vm7, %v254_v20, %v257_v21  ;;  %v272_v39 = vsel %vm270_vm11, %v260_v27, 2102212464 }
  0x2f   :  { %v83_v38 = vadd.s32 %v82_v35, %v78_v5  ;;  %v276_v40 = vsel %vm270_vm11, %v263_v31, 920167782  ;;  %v279_v42 = vsel %vm267_vm7, %v257_v21, %v260_v27  ;;  %v273_v43 = vsel %vm269_vm10, %v257_v21, %v272_v39 }
  0x30   :  { %v277_v44 = vsel %vm269_vm10, %v260_v27, %v276_v40  ;;  %v280_v45 = vsel %vm270_vm11, %v266_v33, 1326507024  ;;  %vm458_vm12 = vcmp.gt.s32.totalorder %v457_v29, 0  ;;  %v447_v48 = vand.u32 2147483647, %v2400_v4 }
  0x31   :  { %v84_v24 = vadd.s32 536870912, %v83_v38  ;;  %v278_v46 = vsel %vm268_vm9, %v275_v37, %v277_v44  ;;  %v281_v47 = vsel %vm269_vm10, %v263_v31, %v280_v45  ;;  %v274_v50 = vsel %vm268_vm9, %v271_v36, %v273_v43 }
  0x32   :  { %v282_v51 = vsel %vm268_vm9, %v279_v42, %v281_v47  ;;  %v2470_v52 = vmul.u32.u64.low %v2411_v23, %v278_v46  ;;  %v2471_v53 = vmul.u32.u64.high %v2411_v23, %v278_v46, %v2470_v52  ;;  %v459_v57 = vsel %vm458_vm12, %v457_v29, 0 }
  0x33   :  { %v85_v54 = vshrl.u32 %v84_v24, 30  ;;  %v2474_v55 = vmul.u32.u64.low %v2411_v23, %v282_v51  ;;  %v2475_v56 = vmul.u32.u64.high %v2411_v23, %v282_v51, %v2474_v55  ;;  %v461_v58 = vand.u32 31, %v459_v57 }
  0x34   :  { %v290_v60 = vmul.u32 %v2411_v23, %v274_v50  ;;  %v293_v61 = vadd.s32 1, %v2471_v53  ;;  %v454_v49 = vand.u32 8388607, %v447_v48  ;;  %v2483_v63 = vmul.f32 8.0, %v2387_v0 }
  0x35   :  { %v86_v59 = vshll.u32 %v85_v54, 30  ;;  %vm292_vm13 = vc.u32 %v2475_v56, %v2470_v52  ;;  %v109_v2 = vsub.s32 4, %v85_v54  ;;  %v462_v6 = vsub.s32 32, %v461_v58 }
  0x36   :  { %v294_v5 = vsel %vm292_vm13, %v293_v61, %v2471_v53  ;;  %v455_v23 = vor.u32 8388608, %v454_v49  ;;  %v659_v12 = vand.u32 2147483647, %v2483_v63  ;;  %v2489_v13 = vmul.f32 16.0, %v2387_v0 }
  0x37   :  { %v87_v62 = vsub.s32 %v83_v38, %v86_v59  ;;  %v295_v11 = vadd.s32 %v294_v5, %v290_v60  ;;  %v464_v16 = vshll.u32 %v2359_v26, %v461_v58  ;;  %v662_v17 = vand.u32 2139095040, %v2483_v63 }
  0x38   :  { %v110_v18 = vsel %vm25_vm14, %v109_v2, %v85_v54  ;;  %v465_v20 = vshrl.u32 %v2360_v28, %v462_v6  ;;  %v467_v21 = vshll.u32 %v2360_v28, %v461_v58  ;;  %v468_v25 = vshrl.u32 %v2361_v30, %v462_v6 }
  0x39   :  { %v89_v8 = vsub.s32 0, %v87_v62  ;;  %v296_v19 = vadd.s32 536870912, %v295_v11  ;;  %v470_v1 = vshll.u32 %v2361_v30, %v461_v58  ;;  %v471_v27 = vshrl.u32 %v2362_v32, %v462_v6 }
  0x3a   :  { %v79_v29 = vadd.s32 %v2444_v10, %v2441_v9  ;;  %v2508_v33 = vshll.u32 %v455_v23, 8  ;;  %v2512_v35 = vand.u32 8388607, %v659_v12  ;;  %v460_v37 = vshrl.u32 %v459_v57, 5 }
  0x3b   :  { %v2148_v15 = vmin.u32 %v89_v8, %v87_v62  ;;  %v297_v31 = vshrl.u32 %v296_v19, 30  ;;  %v473_v38 = vshll.u32 %v2362_v32, %v461_v58  ;;  %v474_v39 = vshrl.u32 %v2363_v34, %v462_v6 }
  0x3c   :  { %v112_v40 = vsel %vm2493_vm15, 0, %v110_v18  ;;  %v2519_v42 = vadd.s32 %v2470_v52, %v2475_v56  ;;  %v663_v10 = vshrl.u32 %v662_v17, 23  ;;  %v466_v43 = vor.u32 %v465_v20, %v464_v16 }
  0x3d   :  { %v91_v22 = vclz %v2148_v15  ;;  %v298_v9 = vshll.u32 %v297_v31, 30  ;;  %v469_v44 = vor.u32 %v468_v25, %v467_v21  ;;  %v472_v45 = vor.u32 %v471_v27, %v470_v1 }
  0x3e   :  { %v476_v47 = vshll.u32 %v2363_v34, %v461_v58  ;;  %v477_v50 = vshrl.u32 %v2364_v41, %v462_v6  ;;  %v475_v52 = vor.u32 %v474_v39, %v473_v38  ;;  %v463_v56 = vshrl.u32 %v2359_v26, %v462_v6 }
  0x3f   :  { %v2149_v36 = vadd.s32 4294967294, %v91_v22  ;;  %v2522_v46 = vsub.s32 %v295_v11, %v298_v9  ;;  %vm479_vm3 = vcmp.lt.s32.totalorder %v460_v37, 1  ;;  %vm482_vm4 = vcmp.lt.s32.totalorder %v460_v37, 4 }
  0x40   :  { %vm480_vm5 = vcmp.lt.s32.totalorder %v460_v37, 2  ;;  %v484_v60 = vsel %vm482_vm4, %v472_v45, 2102212464  ;;  %v321_v58 = vsub.s32 4, %v297_v31  ;;  %v478_v49 = vor.u32 %v477_v50, %v476_v47 }
  0x41   :  { %vm2150_vm1 = vcmp.lt.s32.totalorder %v2149_v36, 0  ;;  %v301_v55 = vsub.s32 0, %v2522_v46  ;;  %vm481_vm6 = vcmp.lt.s32.totalorder %v460_v37, 3  ;;  %vm2532_vm7 = vcmp.le.f32.partialorder %v235_v7, 0.7853982 }
  0x42   :  { %v94_v24 = vsel %vm2150_vm1, 0, %v2149_v36  ;;  %v487_v6 = vsel %vm479_vm3, %v466_v43, %v469_v44  ;;  %v488_v8 = vsel %vm482_vm4, %v475_v52, 920167782  ;;  %v116_v11 = vadd.s32 3, %v112_v40 }
  0x43   :  { %v95_v51 = vsub.s32 32, %v94_v24  ;;  %v96_v53 = vshll.u32 %v87_v62, %v94_v24  ;;  %v99_v54 = vsub.s32 4294967266, %v94_v24  ;;  %v2158_v61 = vmin.u32 %v301_v55, %v2522_v46 }
  0x44   :  { %v483_v15 = vsel %vm479_vm3, %v463_v56, %v466_v43  ;;  %v485_v16 = vsel %vm481_vm6, %v469_v44, %v484_v60  ;;  %v489_v19 = vsel %vm481_vm6, %v472_v45, %v488_v8  ;;  %v491_v20 = vsel %vm479_vm3, %v469_v44, %v472_v45 }
  0x45   :  { %v97_v57 = vshrl.u32 %v79_v29, %v95_v51  ;;  %v100_v59 = vadd.s32 127, %v99_v54  ;;  %v303_v23 = vclz %v2158_v61  ;;  %v322_v21 = vsel %vm237_vm2, %v321_v58, %v297_v31 }
  0x46   :  { %v490_v22 = vsel %vm480_vm5, %v487_v6, %v489_v19  ;;  %v492_v25 = vsel %vm482_vm4, %v478_v49, 1326507024  ;;  %v486_v38 = vsel %vm480_vm5, %v483_v15, %v485_v16  ;;  %v2177_v9 = vadd.s32 4294967169, %v663_v10 }
  0x47   :  { %v98_v2 = vor.u32 %v97_v57, %v96_v53  ;;  %v101_v62 = vshll.u32 %v100_v59, 23  ;;  %v2159_v7 = vadd.s32 4294967294, %v303_v23  ;;  %v493_v27 = vsel %vm481_vm6, %v475_v52, %v492_v25 }
  0x48   :  { %v2548_v29 = vmul.u32.u64.low %v2508_v33, %v490_v22  ;;  %v2549_v36 = vmul.u32.u64.high %v2508_v33, %v490_v22, %v2548_v29  ;;  %v494_v39 = vsel %vm480_vm5, %v491_v20, %v493_v27  ;;  %v669_v51 = vadd.s32 1, %v2177_v9 }
  0x49   :  { %v102_v17 = vor.u32 4788187, %v101_v62  ;;  %v105_v18 = vcvt.s32.f32 %v98_v2  ;;  %vm2160_vm8 = vcmp.lt.s32.totalorder %v2159_v7, 0  ;;  %v2558_v54 = vand.u32 3, %v112_v40 }
  0x4a   :  { %v306_v44 = vsel %vm2160_vm8, 0, %v2159_v7  ;;  %v2554_v31 = vmul.u32.u64.low %v2508_v33, %v494_v39  ;;  %v2555_v45 = vmul.u32.u64.high %v2508_v33, %v494_v39, %v2554_v31  ;;  %v502_v52 = vmul.u32 %v2508_v33, %v486_v38 }
  0x4b   :  { %v103_v1 = vand.u32 2147483647, %v102_v17  ;;  %v307_v24 = vsub.s32 32, %v306_v44  ;;  %v308_v47 = vshll.u32 %v2522_v46, %v306_v44  ;;  %v311_v50 = vsub.s32 4294967266, %v306_v44 }
  0x4c   :  { %v505_v37 = vadd.s32 1, %v2549_v36  ;;  %v324_v56 = vsel %vm2532_vm7, 0, %v322_v21  ;;  %vm670_vm9 = vcmp.gt.s32.totalorder %v669_v51, 0  ;;  %v2567_v46 = vand.u32 3, %v116_v11 }
  0x4d   :  { %v106_v43 = vmul.f32 %v105_v18, %v103_v1  ;;  %v309_v10 = vshrl.u32 %v2519_v42, %v307_v24  ;;  %v312_v55 = vadd.s32 127, %v311_v50  ;;  %vm504_vm10 = vc.u32 %v2555_v45, %v2548_v29 }
  0x4e   :  { %v671_v40 = vsel %vm670_vm9, %v669_v51, 0  ;;  %v506_v42 = vsel %vm504_vm10, %v505_v37, %v2549_v36  ;;  %v328_v61 = vadd.s32 3, %v324_v56  ;;  %v667_v6 = vor.u32 8388608, %v2512_v35 }
  0x4f   :  { %v107_v53 = vxor.u32 2147483648, %v106_v43  ;;  %v310_v59 = vor.u32 %v309_v10, %v308_v47  ;;  %v313_v60 = vshll.u32 %v312_v55, 23  ;;  %v507_v58 = vadd.s32 %v506_v42, %v502_v52 }
  0x50   :  { %v673_v49 = vand.u32 31, %v671_v40  ;;  %vm119_vm11 = vcmp.eq.s32.totalorder %v2567_v46, 0  ;;  %vm122_vm12 = vcmp.eq.s32.totalorder %v2567_v46, 2  ;;  %vm224_vm13 = vcmp.eq.s32.totalorder %v2558_v54, 0 }
  0x51   :  { %v108_v57 = vsel %vm25_vm14, %v107_v53, %v106_v43  ;;  %v314_v2 = vor.u32 4788187, %v313_v60  ;;  %v317_v62 = vcvt.s32.f32 %v310_v59  ;;  %v508_v8 = vadd.s32 536870912, %v507_v58 }
  0x52   :  { %v111_v33 = vsel %vm2493_vm15, %v2387_v0, %v108_v57  ;;  %v674_v11 = vsub.s32 32, %v673_v49  ;;  %vm227_vm14 = vcmp.eq.s32.totalorder %v2558_v54, 2  ;;  %vm118_vm15 = vcmp.lt.s32.totalorder %v2567_v46, 2 }
  0x53   :  { %2294 = vcosq.f32 %v111_v33  ;;  %v315_v14 = vand.u32 2147483647, %v314_v2  ;;  %vm223_vm1 = vcmp.lt.s32.totalorder %v2558_v54, 2  ;;  %v2581_v23 = vand.u32 3, %v328_v61 }
  0x54   :  { %2296 = vsinq.f32 %v111_v33  ;;  %v2583_v15 = vand.u32 3, %v324_v56  ;;  %v2585_v35 = vshrl.u32 %v508_v8, 30  ;;  %v874_v16 = vand.u32 2139095040, %v2489_v13 }
  0x55   :  { %vm115_vm3 = vweird.f32 %v2387_v0  ;;  %v318_v17 = vmul.f32 %v317_v62, %v315_v14  ;;  %v2590_v18 = vadd.s32 %v2548_v29, %v2555_v45  ;;  %v2592_v19 = vshrl.u32 %v671_v40, 5 }
  0x56   :  { %v2594_v20 = vshll.u32 %v667_v6, 8  ;;  %v510_v7 = vshll.u32 %v2585_v35, 30  ;;  %v676_v21 = vshll.u32 %v2359_v26, %v673_v49  ;;  %v677_v22 = vshrl.u32 %v2360_v28, %v674_v11 }
  0x57   :  { %v679_v25 = vshll.u32 %v2360_v28, %v673_v49  ;;  %v319_v1 = vxor.u32 2147483648, %v318_v17  ;;  %v680_v27 = vshrl.u32 %v2361_v30, %v674_v11  ;;  %v682_v36 = vshll.u32 %v2361_v30, %v673_v49 }
  0x58   :  { %v683_v29 = vshrl.u32 %v2362_v32, %v674_v11  ;;  %vm449_vm4 = vcmp.lt.s32.totalorder %v2400_v4, 0  ;;  %v2604_v38 = vsub.s32 %v507_v58, %v510_v7  ;;  %v685_v39 = vshll.u32 %v2362_v32, %v673_v49 }
  0x59   :  { %v686_v9 = vshrl.u32 %v2363_v34, %v674_v11  ;;  %v2608_v43 = vshrl.u32 %v874_v16, 23  ;;  %v320_v44 = vsel %vm237_vm2, %v319_v1, %v318_v17  ;;  %v675_v31 = vshrl.u32 %v2359_v26, %v674_v11 }
  0x5a   :  { %v688_v45 = vshll.u32 %v2363_v34, %v673_v49  ;;  %v689_v24 = vshrl.u32 %v2364_v41, %v674_v11  ;;  %v323_v50 = vsel %vm2532_vm7, %v2397_v3, %v320_v44  ;;  %v513_v51 = vsub.s32 0, %v2604_v38 }
  0x5b   :  { %v533_v53 = vsub.s32 4, %v2585_v35  ;;  %v678_v52 = vor.u32 %v677_v22, %v676_v21  ;;  %2298 = vcosq.f32 %v323_v50  ;;  %v681_v55 = vor.u32 %v680_v27, %v679_v25 }
  0x5c   :  { %v684_v56 = vor.u32 %v683_v29, %v682_v36  ;;  %2300 = vsinq.f32 %v323_v50  ;;  %v2168_v40 = vmin.u32 %v513_v51, %v2604_v38  ;;  %v687_v33 = vor.u32 %v686_v9, %v685_v39 }
  0x5d   :  { %v2295_v47 = vpop.eup %2294  ;;  %vm334_vm2 = vcmp.eq.s32.totalorder %v2581_v23, 2  ;;  %vm439_vm5 = vcmp.eq.s32.totalorder %v2583_v15, 2  ;;  %v690_v60 = vor.u32 %v689_v24, %v688_v45  ;;  %vm691_vm6 = vcmp.lt.s32.totalorder %v2592_v19, 1 }
  0x5e   :  { %v2297_v37 = vpop.eup %2296  ;;  %v123_v10 = vxor.u32 2147483648, %v2295_v47  ;;  %vm331_vm7 = vcmp.eq.s32.totalorder %v2581_v23, 0  ;;  %vm436_vm8 = vcmp.eq.s32.totalorder %v2583_v15, 0  ;;  %vm2636_vm9 = vcmp.le.f32.partialorder %v447_v48, 0.7853982 }
  0x5f   :  { %v120_v57 = vxor.u32 2147483648, %v2297_v37  ;;  %v515_v49 = vclz %v2168_v40  ;;  %vm694_vm10 = vcmp.lt.s32.totalorder %v2592_v19, 4  ;;  %v534_v54 = vsel %vm449_vm4, %v533_v53, %v2585_v35 }
  0x60   :  { %v124_v59 = vsel %vm122_vm12, %v123_v10, %v2297_v37  ;;  %v229_v5 = vsel %vm227_vm14, %v123_v10, %v2297_v37  ;;  %vm692_vm12 = vcmp.lt.s32.totalorder %v2592_v19, 2  ;;  %vm327_vm14 = vweird.f32 %v2397_v3 }
  0x61   :  { %v121_v42 = vsel %vm119_vm11, %v2295_v47, %v120_v57  ;;  %v226_v61 = vsel %vm224_vm13, %v2295_v47, %v120_v57  ;;  %vm435_vm11 = vcmp.lt.s32.totalorder %v2583_v15, 2  ;;  %vm693_vm13 = vcmp.lt.s32.totalorder %v2592_v19, 3 }
  0x62   :  { %v125_v2 = vsel %vm118_vm15, %v121_v42, %v124_v59  ;;  %v230_v62 = vsel %vm223_vm1, %v226_v61, %v229_v5  ;;  %v2169_v8 = vadd.s32 4294967294, %v515_v49  ;;  %v696_v46 = vsel %vm694_vm10, %v684_v56, 2102212464 }
  0x63   :  { %v126_v48 = vsel %vm115_vm3, nan, %v125_v2  ;;  %v231_v6 = vsel %vm115_vm3, nan, %v230_v62  ;;  %v699_v11 = vsel %vm691_vm6, %v678_v52, %v681_v55  ;;  %v700_v14 = vsel %vm694_vm10, %v687_v33, 920167782 }
  0x64   :  { %2151 = vst.msk [vmem:[%s3370_s1 + $0x4] sm:$0x7] %vm21_vm0, %v126_v48  ;;  %2156 = vst.msk [vmem:[%s3370_s1 + $0x8] sm:$0x7] %vm21_vm0, %v231_v6  ;;  %v703_v16 = vsel %vm691_vm6, %v681_v55, %v684_v56  ;;  %vm2170_vm15 = vcmp.lt.s32.totalorder %v2169_v8, 0  ;;  %v695_v17 = vsel %vm691_vm6, %v675_v31, %v678_v52  ;;  %v701_v7 = vsel %vm693_vm13, %v684_v56, %v700_v14 }
  0x65   :  { %v704_v21 = vsel %vm694_vm10, %v690_v60, 1326507024  ;;  %v518_v35 = vsel %vm2170_vm15, 0, %v2169_v8  ;;  %v697_v22 = vsel %vm693_vm13, %v681_v55, %v696_v46  ;;  %v702_v25 = vsel %vm692_vm12, %v699_v11, %v701_v7  ;;  %v2299_v9 = vpop.eup %2298 }
  0x66   :  { %v705_v1 = vsel %vm693_vm13, %v687_v33, %v704_v21  ;;  %v519_v27 = vsub.s32 32, %v518_v35  ;;  %v520_v36 = vshll.u32 %v2604_v38, %v518_v35  ;;  %v523_v29 = vsub.s32 4294967266, %v518_v35  ;;  %v2301_v47 = vpop.eup %2300 }
  0x67   :  { %v706_v39 = vsel %vm692_vm12, %v703_v16, %v705_v1  ;;  %v2692_v45 = vmul.u32.u64.low %v2594_v20, %v702_v25  ;;  %v2693_v24 = vmul.u32.u64.high %v2594_v20, %v702_v25, %v2692_v45  ;;  %v335_v50 = vxor.u32 2147483648, %v2299_v9 }
  0x68   :  { %v2688_v44 = vmul.u32.u64.low %v2594_v20, %v706_v39  ;;  %v2689_v31 = vmul.u32.u64.high %v2594_v20, %v706_v39, %v2688_v44  ;;  %v521_v51 = vshrl.u32 %v2590_v18, %v519_v27  ;;  %v524_v53 = vadd.s32 127, %v523_v29 }
  0x69   :  { %v698_v38 = vsel %vm692_vm12, %v695_v17, %v697_v22  ;;  %vm330_vm1 = vcmp.lt.s32.totalorder %v2581_v23, 2  ;;  %v332_v52 = vxor.u32 2147483648, %v2301_v47  ;;  %v536_v37 = vsel %vm2636_vm9, 0, %v534_v54 }
  0x6a   :  { %v2187_v10 = vadd.s32 4294967169, %v2608_v43  ;;  %v336_v55 = vsel %vm334_vm2, %v335_v50, %v2301_v47  ;;  %v441_v56 = vsel %vm439_vm5, %v335_v50, %v2301_v47  ;;  %v522_v57 = vor.u32 %v521_v51, %v520_v36 }
  0x6b   :  { %v525_v18 = vshll.u32 %v524_v53, 23  ;;  %v333_v19 = vsel %vm331_vm7, %v2299_v9, %v332_v52  ;;  %v438_v40 = vsel %vm436_vm8, %v2299_v9, %v332_v52  ;;  %v714_v33 = vmul.u32 %v2594_v20, %v698_v38 }
  0x6c   :  { %vm716_vm3 = vc.u32 %v2689_v31, %v2692_v45  ;;  %v337_v43 = vsel %vm330_vm1, %v333_v19, %v336_v55  ;;  %v442_v59 = vsel %vm435_vm11, %v438_v40, %v441_v56  ;;  %v529_v60 = vcvt.s32.f32 %v522_v57 }
  0x6d   :  { %v526_v5 = vor.u32 4788187, %v525_v18  ;;  %v338_v42 = vsel %vm327_vm14, nan, %v337_v43  ;;  %v443_v23 = vsel %vm327_vm14, nan, %v442_v59  ;;  %v717_v61 = vadd.s32 1, %v2693_v24 }
  0x6e   :  { %2161 = vst.msk [vmem:[%s3370_s1 + $0xc] sm:$0x7] %vm21_vm0, %v338_v42  ;;  %2166 = vst.msk [vmem:[%s3370_s1 + $0x10] sm:$0x7] %vm21_vm0, %v443_v23  ;;  %v881_v20 = vadd.s32 1, %v2187_v10  ;;  %v540_v49 = vadd.s32 3, %v536_v37  ;;  %v715_v52 = vadd.s32 %v2692_v45, %v2689_v31  ;;  %vm539_vm10 = vweird.f32 %v2400_v4 }
  0x6f   :  { %v527_v15 = vand.u32 2147483647, %v526_v5  ;;  %v718_v2 = vsel %vm716_vm3, %v717_v61, %v2693_v24  ;;  %v871_v3 = vand.u32 2147483647, %v2489_v13  ;;  %v2732_v62 = vmul.f32 32.0, %v2387_v0 }
  0x70   :  { %v719_v6 = vadd.s32 %v718_v2, %v714_v33  ;;  %vm882_vm2 = vcmp.gt.s32.totalorder %v881_v20, 0  ;;  %v2735_v16 = vand.u32 3, %v540_v49  ;;  %v2737_v17 = vand.u32 3, %v536_v37 }
  0x71   :  { %v530_v48 = vmul.f32 %v529_v60, %v527_v15  ;;  %v883_v8 = vsel %vm882_vm2, %v881_v20, 0  ;;  %v1083_v46 = vand.u32 2147483647, %v2732_v62  ;;  %v878_v7 = vand.u32 8388607, %v871_v3 }
  0x72   :  { %v720_v11 = vadd.s32 536870912, %v719_v6  ;;  %v885_v14 = vand.u32 31, %v883_v8  ;;  %v1086_v25 = vand.u32 2139095040, %v2732_v62  ;;  %v884_v53 = vshrl.u32 %v883_v8, 5 }
  0x73   :  { %v531_v54 = vxor.u32 2147483648, %v530_v48  ;;  %v1090_v29 = vand.u32 8388607, %v1083_v46  ;;  %v879_v51 = vor.u32 8388608, %v878_v7  ;;  %vm543_vm5 = vcmp.eq.s32.totalorder %v2735_v16, 0 }
  0x74   :  { %v2743_v35 = vshrl.u32 %v720_v11, 30  ;;  %v886_v22 = vsub.s32 32, %v885_v14  ;;  %v888_v27 = vshll.u32 %v2359_v26, %v885_v14  ;;  %v891_v36 = vshll.u32 %v2360_v28, %v885_v14 }
  0x75   :  { %v532_v21 = vsel %vm449_vm4, %v531_v54, %v530_v48  ;;  %v894_v9 = vshll.u32 %v2361_v30, %v885_v14  ;;  %v897_v44 = vshll.u32 %v2362_v32, %v885_v14  ;;  %vm546_vm4 = vcmp.eq.s32.totalorder %v2735_v16, 2 }
  0x76   :  { %v535_v1 = vsel %vm2636_vm9, %v2400_v4, %v532_v21  ;;  %v722_v39 = vshll.u32 %v2743_v35, 30  ;;  %v889_v24 = vshrl.u32 %v2360_v28, %v886_v22  ;;  %v892_v58 = vshrl.u32 %v2361_v30, %v886_v22 }
  0x77   :  { %2302 = vcosq.f32 %v535_v1  ;;  %v895_v47 = vshrl.u32 %v2362_v32, %v886_v22  ;;  %v898_v38 = vshrl.u32 %v2363_v34, %v886_v22  ;;  %vm648_vm6 = vcmp.eq.s32.totalorder %v2737_v17, 0 }
  0x78   :  { %2304 = vsinq.f32 %v535_v1  ;;  %v2760_v50 = vsub.s32 %v719_v6, %v722_v39  ;;  %vm651_vm7 = vcmp.eq.s32.totalorder %v2737_v17, 2  ;;  %v900_v37 = vshll.u32 %v2363_v34, %v885_v14 }
  0x79   :  { %v1087_v10 = vshrl.u32 %v1086_v25, 23  ;;  %vm542_vm8 = vcmp.lt.s32.totalorder %v2735_v16, 2  ;;  %vm647_vm9 = vcmp.lt.s32.totalorder %v2737_v17, 2  ;;  %v887_v56 = vshrl.u32 %v2359_v26, %v886_v22 }
  0x7a   :  { %v725_v55 = vsub.s32 0, %v2760_v50  ;;  %v890_v57 = vor.u32 %v889_v24, %v888_v27  ;;  %v1091_v18 = vor.u32 8388608, %v1090_v29  ;;  %v893_v19 = vor.u32 %v892_v58, %v891_v36 }
  0x7b   :  { %v896_v40 = vor.u32 %v895_v47, %v894_v9  ;;  %v899_v33 = vor.u32 %v898_v38, %v897_v44  ;;  %v901_v31 = vshrl.u32 %v2364_v41, %v886_v22  ;;  %vm903_vm11 = vcmp.lt.s32.totalorder %v884_v53, 1 }
  0x7c   :  { %v2178_v45 = vmin.u32 %v725_v55, %v2760_v50  ;;  %v2776_v43 = vshll.u32 %v879_v51, 8  ;;  %v2779_v59 = vmul.f32 64.0, %v2387_v0  ;;  %vm905_vm12 = vcmp.lt.s32.totalorder %v884_v53, 3 }
  0x7d   :  { %v902_v5 = vor.u32 %v901_v31, %v900_v37  ;;  %vm906_vm13 = vcmp.lt.s32.totalorder %v884_v53, 4  ;;  %v2197_v60 = vadd.s32 4294967169, %v1087_v10  ;;  %vm904_vm14 = vcmp.lt.s32.totalorder %v884_v53, 2 }
  0x7e   :  { %v727_v42 = vclz %v2178_v45  ;;  %v907_v23 = vsel %vm903_vm11, %v887_v56, %v890_v57  ;;  %v2781_v61 = vshll.u32 %v1091_v18, 8  ;;  %v908_v15 = vsel %vm906_vm13, %v896_v40, 2102212464 }
  0x7f   :  { %v911_v20 = vsel %vm903_vm11, %v890_v57, %v893_v19  ;;  %v912_v49 = vsel %vm906_vm13, %v899_v33, 920167782  ;;  %v915_v2 = vsel %vm903_vm11, %v893_v19, %v896_v40  ;;  %vm661_vm15 = vcmp.lt.s32.totalorder %v2483_v63, 0 }
  0x80   :  { %v2179_v6 = vadd.s32 4294967294, %v727_v42  ;;  %v909_v8 = vsel %vm905_vm12, %v893_v19, %v908_v15  ;;  %v913_v54 = vsel %vm905_vm12, %v896_v40, %v912_v49  ;;  %v916_v11 = vsel %vm906_vm13, %v902_v5, 1326507024 }
  0x81   :  { %v2303_v48 = vpop.eup %2302  ;;  %v745_v21 = vsub.s32 4, %v2743_v35  ;;  %v910_v22 = vsel %vm904_vm14, %v907_v23, %v909_v8  ;;  %v917_v25 = vsel %vm905_vm12, %v899_v33, %v916_v11  ;;  %v914_v27 = vsel %vm904_vm14, %v911_v20, %v913_v54 }
  0x82   :  { %v2305_v14 = vpop.eup %2304  ;;  %v547_v7 = vxor.u32 2147483648, %v2303_v48  ;;  %vm2180_vm1 = vcmp.lt.s32.totalorder %v2179_v6, 0  ;;  %v918_v36 = vsel %vm904_vm14, %v915_v2, %v917_v25  ;;  %v1093_v44 = vadd.s32 1, %v2197_v60 }
  0x83   :  { %v544_v1 = vxor.u32 2147483648, %v2305_v14  ;;  %v730_v9 = vsel %vm2180_vm1, 0, %v2179_v6  ;;  %vm2824_vm2 = vcmp.le.f32.partialorder %v659_v12, 0.7853982  ;;  %v746_v45 = vsel %vm661_vm15, %v745_v21, %v2743_v35 }
  0x84   :  { %v548_v29 = vsel %vm546_vm4, %v547_v7, %v2305_v14  ;;  %v653_v39 = vsel %vm651_vm7, %v547_v7, %v2305_v14  ;;  %v731_v47 = vsub.s32 32, %v730_v9  ;;  %v732_v51 = vshll.u32 %v2760_v50, %v730_v9 }
  0x85   :  { %v545_v24 = vsel %vm543_vm5, %v2303_v48, %v544_v1  ;;  %v650_v58 = vsel %vm648_vm6, %v2303_v48, %v544_v1  ;;  %v735_v37 = vsub.s32 4294967266, %v730_v9  ;;  %vm1094_vm3 = vcmp.gt.s32.totalorder %v1093_v44, 0 }
  0x86   :  { %v549_v53 = vsel %vm542_vm8, %v545_v24, %v548_v29  ;;  %v654_v38 = vsel %vm647_vm9, %v650_v58, %v653_v39  ;;  %v733_v56 = vshrl.u32 %v715_v52, %v731_v47  ;;  %v1095_v57 = vsel %vm1094_vm3, %v1093_v44, 0 }
  0x87   :  { %v550_v10 = vsel %vm539_vm10, nan, %v549_v53  ;;  %v655_v55 = vsel %vm539_vm10, nan, %v654_v38  ;;  %v736_v16 = vadd.s32 127, %v735_v37  ;;  %v2820_v18 = vshrl.u32 %v1095_v57, 5 }
  0x88   :  { %2171 = vst.msk [vmem:[%s3370_s1 + $0x14] sm:$0x7] %vm21_vm0, %v550_v10  ;;  %2176 = vst.msk [vmem:[%s3370_s1 + $0x18] sm:$0x7] %vm21_vm0, %v655_v55  ;;  %v2817_v17 = vmul.u32.u64.low %v2776_v43, %v918_v36  ;;  %v2818_v50 = vmul.u32.u64.high %v2776_v43, %v918_v36, %v2817_v17  ;;  %v734_v52 = vor.u32 %v733_v56, %v732_v51  ;;  %v1097_v33 = vand.u32 31, %v1095_v57 }
  0x89   :  { %v2829_v19 = vmul.u32.u64.low %v2776_v43, %v914_v27  ;;  %v2830_v40 = vmul.u32.u64.high %v2776_v43, %v914_v27, %v2829_v19  ;;  %v737_v31 = vshll.u32 %v736_v16, 23  ;;  %v926_v5 = vmul.u32 %v2776_v43, %v910_v22 }
  0x8a   :  { %vm1115_vm4 = vcmp.lt.s32.totalorder %v2820_v18, 1  ;;  %v1098_v12 = vsub.s32 32, %v1097_v33  ;;  %v1100_v60 = vshll.u32 %v2359_v26, %v1097_v33  ;;  %v1103_v42 = vshll.u32 %v2360_v28, %v1097_v33 }
  0x8b   :  { %vm1117_vm5 = vcmp.lt.s32.totalorder %v2820_v18, 3  ;;  %v738_v23 = vor.u32 4788187, %v737_v31  ;;  %v741_v15 = vcvt.s32.f32 %v734_v52  ;;  %vm928_vm6 = vc.u32 %v2818_v50, %v2829_v19 }
  0x8c   :  { %v1106_v20 = vshll.u32 %v2361_v30, %v1097_v33  ;;  %v929_v35 = vadd.s32 1, %v2830_v40  ;;  %v1099_v43 = vshrl.u32 %v2359_v26, %v1098_v12  ;;  %v1101_v49 = vshrl.u32 %v2360_v28, %v1098_v12 }
  0x8d   :  { %v1104_v2 = vshrl.u32 %v2361_v30, %v1098_v12  ;;  %v739_v48 = vand.u32 2147483647, %v738_v23  ;;  %v1107_v6 = vshrl.u32 %v2362_v32, %v1098_v12  ;;  %v1109_v8 = vshll.u32 %v2362_v32, %v1097_v33 }
  0x8e   :  { %v1110_v54 = vshrl.u32 %v2363_v34, %v1098_v12  ;;  %v930_v11 = vsel %vm928_vm6, %v929_v35, %v2830_v40  ;;  %v1102_v14 = vor.u32 %v1101_v49, %v1100_v60  ;;  %v1112_v21 = vshll.u32 %v2363_v34, %v1097_v33 }
  0x8f   :  { %v1105_v7 = vor.u32 %v1104_v2, %v1103_v42  ;;  %v742_v22 = vmul.f32 %v741_v15, %v739_v48  ;;  %v931_v25 = vadd.s32 %v930_v11, %v926_v5  ;;  %v1108_v1 = vor.u32 %v1107_v6, %v1106_v20 }
  0x90   :  { %v1111_v27 = vor.u32 %v1110_v54, %v1109_v8  ;;  %v1113_v36 = vshrl.u32 %v2364_v41, %v1098_v12  ;;  %vm1116_vm7 = vcmp.lt.s32.totalorder %v2820_v18, 2  ;;  %vm1118_vm8 = vcmp.lt.s32.totalorder %v2820_v18, 4 }
  0x91   :  { %v1123_v29 = vsel %vm1115_vm4, %v1102_v14, %v1105_v7  ;;  %v743_v39 = vxor.u32 2147483648, %v742_v22  ;;  %v748_v9 = vsel %vm2824_vm2, 0, %v746_v45  ;;  %v932_v44 = vadd.s32 536870912, %v931_v25 }
  0x92   :  { %v1124_v24 = vsel %vm1118_vm8, %v1111_v27, 920167782  ;;  %v1114_v58 = vor.u32 %v1113_v36, %v1112_v21  ;;  %v1119_v47 = vsel %vm1115_vm4, %v1099_v43, %v1102_v14  ;;  %v1120_v51 = vsel %vm1118_vm8, %v1108_v1, 2102212464 }
  0x93   :  { %v1125_v53 = vsel %vm1117_vm5, %v1108_v1, %v1124_v24  ;;  %v744_v38 = vsel %vm661_vm15, %v743_v39, %v742_v22  ;;  %v933_v37 = vshrl.u32 %v932_v44, 30  ;;  %v1127_v55 = vsel %vm1115_vm4, %v1105_v7, %v1108_v1 }
  0x94   :  { %v1126_v10 = vsel %vm1116_vm7, %v1123_v29, %v1125_v53  ;;  %v747_v56 = vsel %vm2824_vm2, %v2483_v63, %v744_v38  ;;  %v1128_v57 = vsel %vm1118_vm8, %v1114_v58, 1326507024  ;;  %v1121_v40 = vsel %vm1117_vm5, %v1105_v7, %v1120_v51 }
  0x95   :  { %v2874_v16 = vmul.u32.u64.low %v2781_v61, %v1126_v10  ;;  %v2875_v17 = vmul.u32.u64.high %v2781_v61, %v1126_v10, %v2874_v16  ;;  %2306 = vcosq.f32 %v747_v56  ;;  %v934_v52 = vshll.u32 %v933_v37, 30 }
  0x96   :  { %v1129_v33 = vsel %vm1117_vm5, %v1111_v27, %v1128_v57  ;;  %2308 = vsinq.f32 %v747_v56  ;;  %v752_v31 = vadd.s32 3, %v748_v9  ;;  %v1122_v60 = vsel %vm1116_vm7, %v1119_v47, %v1121_v40 }
  0x97   :  { %v1130_v4 = vsel %vm1116_vm7, %v1127_v55, %v1129_v33  ;;  %v935_v45 = vsub.s32 %v931_v25, %v934_v52  ;;  %v1298_v42 = vand.u32 2139095040, %v2779_v59  ;;  %v858_v23 = vand.u32 3, %v748_v9 }
  0x98   :  { %v2885_v5 = vmul.u32.u64.low %v2781_v61, %v1130_v4  ;;  %v2886_v12 = vmul.u32.u64.high %v2781_v61, %v1130_v4, %v2885_v5  ;;  %v957_v20 = vsub.s32 4, %v933_v37  ;;  %v753_v35 = vand.u32 3, %v752_v31 }
  0x99   :  { %v937_v15 = vsub.s32 0, %v935_v45  ;;  %v1141_v43 = vadd.s32 1, %v2875_v17  ;;  %v1299_v49 = vshrl.u32 %v1298_v42, 23  ;;  %vm751_vm9 = vweird.f32 %v2483_v63 }
  0x9a   :  { %vm2895_vm10 = vcmp.le.f32.partialorder %v871_v3, 0.7853982  ;;  %v1138_v18 = vmul.u32 %v2781_v61, %v1122_v60  ;;  %vm873_vm11 = vcmp.lt.s32.totalorder %v2489_v13, 0  ;;  %vm1140_vm12 = vc.u32 %v2886_v12, %v2874_v16 }
  0x9b   :  { %v2188_v48 = vmin.u32 %v937_v15, %v935_v45  ;;  %v1295_v6 = vand.u32 2147483647, %v2779_v59  ;;  %v2207_v8 = vadd.s32 4294967169, %v1299_v49  ;;  %vm859_vm13 = vcmp.lt.s32.totalorder %v858_v23, 2 }
  0x9c   :  { %vm860_vm14 = vcmp.eq.s32.totalorder %v858_v23, 0  ;;  %v958_v3 = vsel %vm873_vm11, %v957_v20, %v933_v37  ;;  %vm754_vm15 = vcmp.lt.s32.totalorder %v753_v35, 2  ;;  %vm863_vm1 = vcmp.eq.s32.totalorder %v858_v23, 2 }
  0x9d   :  { %v939_v54 = vclz %v2188_v48  ;;  %v1142_v11 = vsel %vm1140_vm12, %v1141_v43, %v2875_v17  ;;  %v1305_v14 = vadd.s32 1, %v2207_v8  ;;  %vm755_vm3 = vcmp.eq.s32.totalorder %v753_v35, 0 }
  0x9e   :  { %vm758_vm2 = vcmp.eq.s32.totalorder %v753_v35, 2  ;;  %v1143_v21 = vadd.s32 %v1142_v11, %v1138_v18  ;;  %v927_v1 = vadd.s32 %v2829_v19, %v2818_v50  ;;  %v960_v27 = vsel %vm2895_vm10, 0, %v958_v3 }
  0x9f   :  { %v2307_v61 = vpop.eup %2306  ;;  %v2189_v7 = vadd.s32 4294967294, %v939_v54  ;;  %vm1306_vm4 = vcmp.gt.s32.totalorder %v1305_v14, 0  ;;  %v1302_v39 = vand.u32 8388607, %v1295_v6  ;;  %v2933_v63 = vadd.s32 3, %v960_v27 }
  0xa0   :  { %v2309_v22 = vpop.eup %2308  ;;  %v759_v25 = vxor.u32 2147483648, %v2307_v61  ;;  %v1144_v29 = vadd.s32 536870912, %v1143_v21  ;;  %v1307_v58 = vsel %vm1306_vm4, %v1305_v14, 0  ;;  %v2942_v15 = vmul.f32 128.0, %v2387_v0 }
  0xa1   :  { %v756_v36 = vxor.u32 2147483648, %v2309_v22  ;;  %vm2190_vm5 = vcmp.lt.s32.totalorder %v2189_v7, 0  ;;  %v1309_v17 = vand.u32 31, %v1307_v58  ;;  %v1303_v5 = vor.u32 8388608, %v1302_v39 }
  0xa2   :  { %v760_v9 = vsel %vm758_vm2, %v759_v25, %v2309_v22  ;;  %v865_v44 = vsel %vm863_vm1, %v759_v25, %v2309_v22  ;;  %v942_v24 = vsel %vm2190_vm5, 0, %v2189_v7  ;;  %v2918_v10 = vshrl.u32 %v1144_v29, 30 }
  0xa3   :  { %v757_v47 = vsel %vm755_vm3, %v2307_v61, %v756_v36  ;;  %v862_v51 = vsel %vm860_vm14, %v2307_v61, %v756_v36  ;;  %v943_v50 = vsub.s32 32, %v942_v24  ;;  %v944_v19 = vshll.u32 %v935_v45, %v942_v24 }
  0xa4   :  { %v761_v53 = vsel %vm754_vm15, %v757_v47, %v760_v9  ;;  %v866_v38 = vsel %vm859_vm13, %v862_v51, %v865_v44  ;;  %v947_v37 = vsub.s32 4294967266, %v942_v24  ;;  %v1146_v40 = vshll.u32 %v2918_v10, 30 }
  0xa5   :  { %v762_v55 = vsel %vm751_vm9, nan, %v761_v53  ;;  %v867_v56 = vsel %vm751_vm9, nan, %v866_v38  ;;  %v945_v57 = vshrl.u32 %v927_v1, %v943_v50  ;;  %v1310_v31 = vsub.s32 32, %v1309_v17 }
  0xa6   :  { %2181 = vst.msk [vmem:[%s3370_s1 + $0x1c] sm:$0x7] %vm21_vm0, %v762_v55  ;;  %2186 = vst.msk [vmem:[%s3370_s1 + $0x20] sm:$0x7] %vm21_vm0, %v867_v56  ;;  %v948_v52 = vadd.s32 127, %v947_v37  ;;  %v2935_v45 = vsub.s32 %v1143_v21, %v1146_v40  ;;  %v2937_v60 = vshrl.u32 %v1307_v58, 5  ;;  %v1312_v42 = vshll.u32 %v2359_v26, %v1309_v17 }
  0xa7   :  { %v946_v33 = vor.u32 %v945_v57, %v944_v19  ;;  %v1315_v23 = vshll.u32 %v2360_v28, %v1309_v17  ;;  %v1313_v49 = vshrl.u32 %v2360_v28, %v1310_v31  ;;  %v2946_v48 = vand.u32 3, %v960_v27 }
  0xa8   :  { %v949_v4 = vshll.u32 %v948_v52, 23  ;;  %v1149_v43 = vsub.s32 0, %v2935_v45  ;;  %v1316_v18 = vshrl.u32 %v2361_v30, %v1310_v31  ;;  %v1318_v8 = vshll.u32 %v2361_v30, %v1309_v17 }
  0xa9   :  { %v953_v35 = vcvt.s32.f32 %v946_v33  ;;  %v1319_v54 = vshrl.u32 %v2362_v32, %v1310_v31  ;;  %v1139_v11 = vadd.s32 %v2874_v16, %v2886_v12  ;;  %v2954_v61 = vshll.u32 %v1303_v5, 8 }
  0xaa   :  { %v950_v20 = vor.u32 4788187, %v949_v4  ;;  %v2198_v14 = vmin.u32 %v1149_v43, %v2935_v45  ;;  %v1311_v7 = vshrl.u32 %v2359_v26, %v1310_v31  ;;  %v1321_v21 = vshll.u32 %v2362_v32, %v1309_v17 }
  0xab   :  { %vm1327_vm6 = vcmp.lt.s32.totalorder %v2937_v60, 1  ;;  %v1510_v22 = vand.u32 2139095040, %v2942_v15  ;;  %v1314_v27 = vor.u32 %v1313_v49, %v1312_v42  ;;  %v1317_v36 = vor.u32 %v1316_v18, %v1315_v23 }
  0xac   :  { %v951_v3 = vand.u32 2147483647, %v950_v20  ;;  %v1151_v1 = vclz %v2198_v14  ;;  %v1320_v29 = vor.u32 %v1319_v54, %v1318_v8  ;;  %v1322_v39 = vshrl.u32 %v2363_v34, %v1310_v31 }
  0xad   :  { %v1324_v16 = vshll.u32 %v2363_v34, %v1309_v17  ;;  %v1325_v12 = vshrl.u32 %v2364_v41, %v1310_v31  ;;  %vm1328_vm7 = vcmp.lt.s32.totalorder %v2937_v60, 2  ;;  %vm1329_vm8 = vcmp.lt.s32.totalorder %v2937_v60, 3 }
  0xae   :  { %v954_v25 = vmul.f32 %v953_v35, %v951_v3  ;;  %v2199_v44 = vadd.s32 4294967294, %v1151_v1  ;;  %vm1085_vm9 = vcmp.lt.s32.totalorder %v2732_v62, 0  ;;  %v1323_v24 = vor.u32 %v1322_v39, %v1321_v21 }
  0xaf   :  { %v1326_v58 = vor.u32 %v1325_v12, %v1324_v16  ;;  %vm1330_vm12 = vcmp.lt.s32.totalorder %v2937_v60, 4  ;;  %v1331_v47 = vsel %vm1327_vm6, %v1311_v7, %v1314_v27  ;;  %v1335_v19 = vsel %vm1327_vm6, %v1314_v27, %v1317_v36 }
  0xb0   :  { %v955_v9 = vxor.u32 2147483648, %v954_v25  ;;  %vm2200_vm13 = vcmp.lt.s32.totalorder %v2199_v44, 0  ;;  %v1332_v50 = vsel %vm1330_vm12, %v1320_v29, 2102212464  ;;  %v1336_v55 = vsel %vm1330_vm12, %v1323_v24, 920167782 }
  0xb1   :  { %v1154_v38 = vsel %vm2200_vm13, 0, %v2199_v44  ;;  %v1333_v37 = vsel %vm1329_vm8, %v1317_v36, %v1332_v50  ;;  %v1169_v2 = vsub.s32 4, %v2918_v10  ;;  %v1337_v40 = vsel %vm1329_vm8, %v1320_v29, %v1336_v55 }
  0xb2   :  { %v956_v51 = vsel %vm873_vm11, %v955_v9, %v954_v25  ;;  %vm2984_vm11 = vcmp.le.f32.partialorder %v1083_v46, 0.7853982  ;;  %v1155_v57 = vsub.s32 32, %v1154_v38  ;;  %v1156_v17 = vshll.u32 %v2935_v45, %v1154_v38 }
  0xb3   :  { %v959_v53 = vsel %vm2895_vm10, %v2489_v13, %v956_v51  ;;  %v1159_v52 = vsub.s32 4294967266, %v1154_v38  ;;  %v1339_v33 = vsel %vm1327_vm6, %v1317_v36, %v1320_v29  ;;  %v1338_v46 = vsel %vm1328_vm7, %v1335_v19, %v1337_v40 }
  0xb4   :  { %2310 = vcosq.f32 %v959_v53  ;;  %v1157_v31 = vshrl.u32 %v1139_v11, %v1155_v57  ;;  %v1340_v5 = vsel %vm1330_vm12, %v1326_v58, 1326507024  ;;  %v1334_v45 = vsel %vm1328_vm7, %v1331_v47, %v1333_v37 }
  0xb5   :  { %2312 = vsinq.f32 %v959_v53  ;;  %v1160_v4 = vadd.s32 127, %v1159_v52  ;;  %v1341_v42 = vsel %vm1329_vm8, %v1323_v24, %v1340_v5  ;;  %v1511_v18 = vshrl.u32 %v1510_v22, 23 }
  0xb6   :  { %v3003_v23 = vmul.u32.u64.low %v2954_v61, %v1338_v46  ;;  %v3004_v20 = vmul.u32.u64.high %v2954_v61, %v1338_v46, %v3003_v23  ;;  %v1158_v35 = vor.u32 %v1157_v31, %v1156_v17  ;;  %v1342_v49 = vsel %vm1328_vm7, %v1339_v33, %v1341_v42 }
  0xb7   :  { %v1161_v43 = vshll.u32 %v1160_v4, 23  ;;  %vm963_vm10 = vweird.f32 %v2489_v13  ;;  %v965_v8 = vand.u32 3, %v2933_v63  ;;  %v3016_v11 = vmul.f32 256.0, %v2387_v0 }
  0xb8   :  { %v3012_v54 = vmul.u32.u64.low %v2954_v61, %v1342_v49  ;;  %v3013_v3 = vmul.u32.u64.high %v2954_v61, %v1342_v49, %v3012_v54  ;;  %v1165_v7 = vcvt.s32.f32 %v1158_v35  ;;  %v1170_v21 = vsel %vm1085_vm9, %v1169_v2, %v2918_v10 }
  0xb9   :  { %v1162_v14 = vor.u32 4788187, %v1161_v43  ;;  %v2217_v60 = vadd.s32 4294967169, %v1511_v18  ;;  %vm1071_vm14 = vcmp.lt.s32.totalorder %v2946_v48, 2  ;;  %v1350_v22 = vmul.u32 %v2954_v61, %v1334_v45 }
  0xba   :  { %v1353_v63 = vadd.s32 1, %v3004_v20  ;;  %v1507_v25 = vand.u32 2147483647, %v2942_v15  ;;  %vm1072_vm15 = vcmp.eq.s32.totalorder %v2946_v48, 0  ;;  %vm1075_vm1 = vcmp.eq.s32.totalorder %v2946_v48, 2 }
  0xbb   :  { %v1163_v1 = vand.u32 2147483647, %v1162_v14  ;;  %v1517_v27 = vadd.s32 1, %v2217_v60  ;;  %vm966_vm3 = vcmp.lt.s32.totalorder %v965_v8, 2  ;;  %vm967_vm2 = vcmp.eq.s32.totalorder %v965_v8, 0 }
  0xbc   :  { %v1172_v10 = vsel %vm2984_vm11, 0, %v1170_v21  ;;  %vm1352_vm4 = vc.u32 %v3013_v3, %v3003_v23  ;;  %vm970_vm5 = vcmp.eq.s32.totalorder %v965_v8, 2  ;;  %v1514_v9 = vand.u32 8388607, %v1507_v25 }
  0xbd   :  { %v1166_v61 = vmul.f32 %v1165_v7, %v1163_v1  ;;  %v1354_v29 = vsel %vm1352_vm4, %v1353_v63, %v3004_v20  ;;  %vm1518_vm6 = vcmp.gt.s32.totalorder %v1517_v27, 0  ;;  %v1176_v47 = vadd.s32 3, %v1172_v10 }
  0xbe   :  { %v2311_v36 = vpop.eup %2310  ;;  %v1355_v12 = vadd.s32 %v1354_v29, %v1350_v22  ;;  %v1519_v44 = vsel %vm1518_vm6, %v1517_v27, 0  ;;  %v3036_v53 = vand.u32 3, %v1172_v10  ;;  %v1722_v13 = vand.u32 2139095040, %v3016_v11 }
  0xbf   :  { %v2313_v39 = vpop.eup %2312  ;;  %v971_v16 = vxor.u32 2147483648, %v2311_v36  ;;  %v1167_v58 = vxor.u32 2147483648, %v1166_v61  ;;  %v1521_v51 = vand.u32 31, %v1519_v44  ;;  %v3055_v46 = vand.u32 3, %v1176_v47 }
  0xc0   :  { %v968_v24 = vxor.u32 2147483648, %v2313_v39  ;;  %v1356_v38 = vadd.s32 536870912, %v1355_v12  ;;  %vm1287_vm7 = vcmp.eq.s32.totalorder %v3036_v53, 2  ;;  %vm1284_vm8 = vcmp.eq.s32.totalorder %v3036_v53, 0 }
  0xc1   :  { %v972_v50 = vsel %vm970_vm5, %v971_v16, %v2313_v39  ;;  %v1077_v19 = vsel %vm1075_vm1, %v971_v16, %v2313_v39  ;;  %v1168_v57 = vsel %vm1085_vm9, %v1167_v58, %v1166_v61  ;;  %v1522_v17 = vsub.s32 32, %v1521_v51 }
  0xc2   :  { %v969_v37 = vsel %vm967_vm2, %v2311_v36, %v968_v24  ;;  %v1074_v55 = vsel %vm1072_vm15, %v2311_v36, %v968_v24  ;;  %v1171_v40 = vsel %vm2984_vm11, %v2732_v62, %v1168_v57  ;;  %v3049_v33 = vshrl.u32 %v1356_v38, 30 }
  0xc3   :  { %v973_v52 = vsel %vm966_vm3, %v969_v37, %v972_v50  ;;  %v1078_v2 = vsel %vm1071_vm14, %v1074_v55, %v1077_v19  ;;  %2314 = vcosq.f32 %v1171_v40  ;;  %v1524_v56 = vshll.u32 %v2359_v26, %v1521_v51 }
  0xc4   :  { %v974_v31 = vsel %vm963_vm10, nan, %v973_v52  ;;  %v1079_v4 = vsel %vm963_vm10, nan, %v1078_v2  ;;  %2316 = vsinq.f32 %v1171_v40  ;;  %v1358_v48 = vshll.u32 %v3049_v33, 30 }
  0xc5   :  { %2191 = vst.msk [vmem:[%s3370_s1 + $0x24] sm:$0x7] %vm21_vm0, %v974_v31  ;;  %2196 = vst.msk [vmem:[%s3370_s1 + $0x28] sm:$0x7] %vm21_vm0, %v1079_v4  ;;  %v1525_v5 = vshrl.u32 %v2360_v28, %v1522_v17  ;;  %v1527_v45 = vshll.u32 %v2360_v28, %v1521_v51  ;;  %v1528_v42 = vshrl.u32 %v2361_v30, %v1522_v17  ;;  %v3076_v43 = vshrl.u32 %v1519_v44, 5 }
  0xc6   :  { %v1530_v20 = vshll.u32 %v2361_v30, %v1521_v51  ;;  %v3074_v35 = vsub.s32 %v1355_v12, %v1358_v48  ;;  %v1531_v49 = vshrl.u32 %v2362_v32, %v1522_v17  ;;  %v1533_v18 = vshll.u32 %v2362_v32, %v1521_v51 }
  0xc7   :  { %vm1178_vm9 = vcmp.lt.s32.totalorder %v3055_v46, 2  ;;  %vm1179_vm12 = vcmp.eq.s32.totalorder %v3055_v46, 0  ;;  %vm1283_vm13 = vcmp.lt.s32.totalorder %v3036_v53, 2  ;;  %v1515_v8 = vor.u32 8388608, %v1514_v9 }
  0xc8   :  { %v1534_v54 = vshrl.u32 %v2363_v34, %v1522_v17  ;;  %vm1175_vm11 = vweird.f32 %v2732_v62  ;;  %v1361_v14 = vsub.s32 0, %v3074_v35  ;;  %v1523_v7 = vshrl.u32 %v2359_v26, %v1522_v17 }
  0xc9   :  { %v1526_v21 = vor.u32 %v1525_v5, %v1524_v56  ;;  %v1723_v60 = vshrl.u32 %v1722_v13, 23  ;;  %v1529_v22 = vor.u32 %v1528_v42, %v1527_v45  ;;  %v1532_v63 = vor.u32 %v1531_v49, %v1530_v20 }
  0xca   :  { %v1536_v1 = vshll.u32 %v2363_v34, %v1521_v51  ;;  %v1537_v27 = vshrl.u32 %v2364_v41, %v1522_v17  ;;  %vm1182_vm10 = vcmp.eq.s32.totalorder %v3055_v46, 2  ;;  %v2208_v10 = vmin.u32 %v1361_v14, %v3074_v35 }
  0xcb   :  { %v1535_v36 = vor.u32 %v1534_v54, %v1533_v18  ;;  %vm1539_vm14 = vcmp.lt.s32.totalorder %v3076_v43, 1  ;;  %v1351_v61 = vadd.s32 %v3003_v23, %v3013_v3  ;;  %v3094_v39 = vshll.u32 %v1515_v8, 8 }
  0xcc   :  { %v1538_v29 = vor.u32 %v1537_v27, %v1536_v1  ;;  %v1719_v16 = vand.u32 2147483647, %v3016_v11  ;;  %v1363_v12 = vclz %v2208_v10  ;;  %vm1540_vm15 = vcmp.lt.s32.totalorder %v3076_v43, 2 }
  0xcd   :  { %vm1541_vm1 = vcmp.lt.s32.totalorder %v3076_v43, 3  ;;  %v2227_v9 = vadd.s32 4294967169, %v1723_v60  ;;  %v2315_v44 = vpop.eup %2314  ;;  %vm1542_vm3 = vcmp.lt.s32.totalorder %v3076_v43, 4  ;;  %v1543_v24 = vsel %vm1539_vm14, %v1523_v7, %v1526_v21 }
  0xce   :  { %v1547_v58 = vsel %vm1539_vm14, %v1526_v21, %v1529_v22  ;;  %v1551_v47 = vsel %vm1539_vm14, %v1529_v22, %v1532_v63  ;;  %v2317_v51 = vpop.eup %2316  ;;  %v1183_v50 = vxor.u32 2147483648, %v2315_v44  ;;  %v2209_v23 = vadd.s32 4294967294, %v1363_v12 }
  0xcf   :  { %v1544_v3 = vsel %vm1542_vm3, %v1532_v63, 2102212464  ;;  %v1548_v19 = vsel %vm1542_vm3, %v1535_v36, 920167782  ;;  %v1180_v38 = vxor.u32 2147483648, %v2317_v51  ;;  %v1381_v21 = vsub.s32 4, %v3049_v33 }
  0xd0   :  { %v1545_v37 = vsel %vm1541_vm1, %v1529_v22, %v1544_v3  ;;  %v1549_v55 = vsel %vm1541_vm1, %v1532_v63, %v1548_v19  ;;  %v1552_v57 = vsel %vm1542_vm3, %v1538_v29, 1326507024  ;;  %v1184_v17 = vsel %vm1182_vm10, %v1183_v50, %v2317_v51 }
  0xd1   :  { %v1289_v52 = vsel %vm1287_vm7, %v1183_v50, %v2317_v51  ;;  %vm2210_vm2 = vcmp.lt.s32.totalorder %v2209_v23, 0  ;;  %v1546_v2 = vsel %vm1540_vm15, %v1543_v24, %v1545_v37  ;;  %v1181_v40 = vsel %vm1179_vm12, %v2315_v44, %v1180_v38 }
  0xd2   :  { %v1286_v31 = vsel %vm1284_vm8, %v2315_v44, %v1180_v38  ;;  %v1366_v4 = vsel %vm2210_vm2, 0, %v2209_v23  ;;  %v1550_v48 = vsel %vm1540_vm15, %v1547_v58, %v1549_v55  ;;  %v1185_v56 = vsel %vm1178_vm9, %v1181_v40, %v1184_v17 }
  0xd3   :  { %v1290_v13 = vsel %vm1283_vm13, %v1286_v31, %v1289_v52  ;;  %v1367_v5 = vsub.s32 32, %v1366_v4  ;;  %v1368_v45 = vshll.u32 %v3074_v35, %v1366_v4  ;;  %v1186_v42 = vsel %vm1175_vm11, nan, %v1185_v56 }
  0xd4   :  { %v1291_v20 = vsel %vm1175_vm11, nan, %v1290_v13  ;;  %v1371_v49 = vsub.s32 4294967266, %v1366_v4  ;;  %v1553_v18 = vsel %vm1541_vm1, %v1535_v36, %v1552_v57  ;;  %2201 = vst.msk [vmem:[%s3370_s1 + $0x2c] sm:$0x7] %vm21_vm0, %v1186_v42  ;;  %v1729_v60 = vadd.s32 1, %v2227_v9 }
  0xd5   :  { %2206 = vst.msk [vmem:[%s3370_s1 + $0x30] sm:$0x7] %vm21_vm0, %v1291_v20  ;;  %v1369_v53 = vshrl.u32 %v1351_v61, %v1367_v5  ;;  %v1554_v46 = vsel %vm1540_vm15, %v1551_v47, %v1553_v18  ;;  %v3138_v62 = vmul.u32.u64.low %v3094_v39, %v1550_v48  ;;  %v3139_v35 = vmul.u32.u64.high %v3094_v39, %v1550_v48, %v3138_v62 }
  0xd6   :  { %v1372_v8 = vadd.s32 127, %v1371_v49  ;;  %v3143_v54 = vmul.u32.u64.low %v3094_v39, %v1554_v46  ;;  %v3144_v14 = vmul.u32.u64.high %v3094_v39, %v1554_v46, %v3143_v54  ;;  %v1562_v63 = vmul.u32 %v3094_v39, %v1546_v2 }
  0xd7   :  { %v1370_v7 = vor.u32 %v1369_v53, %v1368_v45  ;;  %vm1297_vm4 = vcmp.lt.s32.totalorder %v2779_v59, 0  ;;  %v1565_v43 = vadd.s32 1, %v3139_v35  ;;  %v1726_v1 = vand.u32 8388607, %v1719_v16 }
  0xd8   :  { %v1373_v22 = vshll.u32 %v1372_v8, 23  ;;  %vm1730_vm5 = vcmp.gt.s32.totalorder %v1729_v60, 0  ;;  %vm1564_vm6 = vc.u32 %v3144_v14, %v3138_v62  ;;  %v1382_v61 = vsel %vm1297_vm4, %v1381_v21, %v3049_v33 }
  0xd9   :  { %v1377_v10 = vcvt.s32.f32 %v1370_v7  ;;  %v1731_v36 = vsel %vm1730_vm5, %v1729_v60, 0  ;;  %v1566_v29 = vsel %vm1564_vm6, %v1565_v43, %v3139_v35  ;;  %vm3160_vm7 = vcmp.le.f32.partialorder %v1295_v6, 0.7853982 }
  0xda   :  { %v1374_v27 = vor.u32 4788187, %v1373_v22  ;;  %v1733_v39 = vand.u32 31, %v1731_v36  ;;  %v1567_v9 = vadd.s32 %v1566_v29, %v1562_v63  ;;  %v1727_v24 = vor.u32 8388608, %v1726_v1 }
  0xdb   :  { %v3165_v47 = vmul.f32 512.0, %v2387_v0  ;;  %v1384_v33 = vsel %vm3160_vm7, 0, %v1382_v61  ;;  %v3169_v23 = vshrl.u32 %v1731_v36, 5  ;;  %vm1387_vm14 = vweird.f32 %v2779_v59 }
  0xdc   :  { %v1375_v12 = vand.u32 2147483647, %v1374_v27  ;;  %v1734_v58 = vsub.s32 32, %v1733_v39  ;;  %v1568_v50 = vadd.s32 536870912, %v1567_v9  ;;  %v1736_v3 = vshll.u32 %v2359_v26, %v1733_v39 }
  0xdd   :  { %v1739_v6 = vshll.u32 %v2360_v28, %v1733_v39  ;;  %v1745_v38 = vshll.u32 %v2362_v32, %v1733_v39  ;;  %v1742_v17 = vshll.u32 %v2361_v30, %v1733_v39  ;;  %v1748_v2 = vshll.u32 %v2363_v34, %v1733_v39 }
  0xde   :  { %v1378_v51 = vmul.f32 %v1377_v10, %v1375_v12  ;;  %v1737_v19 = vshrl.u32 %v2360_v28, %v1734_v58  ;;  %v3175_v55 = vshrl.u32 %v1568_v50, 30  ;;  %v1740_v0 = vshrl.u32 %v2361_v30, %v1734_v58 }
  0xdf   :  { %v1746_v57 = vshrl.u32 %v2363_v34, %v1734_v58  ;;  %v1743_v52 = vshrl.u32 %v2362_v32, %v1734_v58  ;;  %v1749_v40 = vshrl.u32 %v2364_v41, %v1734_v58  ;;  %v1388_v4 = vadd.s32 3, %v1384_v33 }
  0xe0   :  { %v1379_v37 = vxor.u32 2147483648, %v1378_v51  ;;  %v3185_v48 = vand.u32 3, %v1384_v33  ;;  %v1570_v56 = vshll.u32 %v3175_v55, 30  ;;  %v1738_v5 = vor.u32 %v1737_v19, %v1736_v3 }
  0xe1   :  { %v1747_v45 = vor.u32 %v1746_v57, %v1745_v38  ;;  %v1934_v42 = vand.u32 2139095040, %v3165_v47  ;;  %v1741_v49 = vor.u32 %v1740_v0, %v1739_v6  ;;  %vm1754_vm8 = vcmp.lt.s32.totalorder %v3169_v23, 4 }
  0xe2   :  { %v1380_v31 = vsel %vm1297_vm4, %v1379_v37, %v1378_v51  ;;  %v3192_v20 = vsub.s32 %v1567_v9, %v1570_v56  ;;  %v1744_v18 = vor.u32 %v1743_v52, %v1742_v17  ;;  %v1750_v53 = vor.u32 %v1749_v40, %v1748_v2 }
  0xe3   :  { %v1383_v13 = vsel %vm3160_vm7, %v2779_v59, %v1380_v31  ;;  %vm1751_vm9 = vcmp.lt.s32.totalorder %v3169_v23, 1  ;;  %v1389_v46 = vand.u32 3, %v1388_v4  ;;  %v1735_v8 = vshrl.u32 %v2359_v26, %v1734_v58 }
  0xe4   :  { %2318 = vcosq.f32 %v1383_v13  ;;  %v1573_v35 = vsub.s32 0, %v3192_v20  ;;  %vm1753_vm12 = vcmp.lt.s32.totalorder %v3169_v23, 3  ;;  %vm1496_vm13 = vcmp.eq.s32.totalorder %v3185_v48, 0 }
  0xe5   :  { %2320 = vsinq.f32 %v1383_v13  ;;  %v1760_v54 = vsel %vm1754_vm8, %v1747_v45, 920167782  ;;  %v3202_v7 = vshll.u32 %v1727_v24, 8  ;;  %v1935_v21 = vshrl.u32 %v1934_v42, 23 }
  0xe6   :  { %vm1495_vm11 = vcmp.lt.s32.totalorder %v3185_v48, 2  ;;  %v2218_v60 = vmin.u32 %v1573_v35, %v3192_v20  ;;  %vm1752_vm10 = vcmp.lt.s32.totalorder %v3169_v23, 2  ;;  %v1756_v22 = vsel %vm1754_vm8, %v1744_v18, 2102212464 }
  0xe7   :  { %v1759_v63 = vsel %vm1751_vm9, %v1738_v5, %v1741_v49  ;;  %vm1499_vm15 = vcmp.eq.s32.totalorder %v3185_v48, 2  ;;  %v1761_v43 = vsel %vm1753_vm12, %v1744_v18, %v1760_v54  ;;  %v1763_v1 = vsel %vm1751_vm9, %v1741_v49, %v1744_v18 }
  0xe8   :  { %v1764_v27 = vsel %vm1754_vm8, %v1750_v53, 1326507024  ;;  %vm1390_vm1 = vcmp.lt.s32.totalorder %v1389_v46, 2  ;;  %vm1391_vm3 = vcmp.eq.s32.totalorder %v1389_v46, 0  ;;  %v1575_v10 = vclz %v2218_v60 }
  0xe9   :  { %v1755_v36 = vsel %vm1751_vm9, %v1735_v8, %v1738_v5  ;;  %v1757_v61 = vsel %vm1753_vm12, %v1741_v49, %v1756_v22  ;;  %v1762_v29 = vsel %vm1752_vm10, %v1759_v63, %v1761_v43  ;;  %v1765_v39 = vsel %vm1753_vm12, %v1747_v45, %v1764_v27 }
  0xea   :  { %v2237_v12 = vadd.s32 4294967169, %v1935_v21  ;;  %v2219_v9 = vadd.s32 4294967294, %v1575_v10  ;;  %v1766_v44 = vsel %vm1752_vm10, %v1763_v1, %v1765_v39  ;;  %vm1394_vm2 = vcmp.eq.s32.totalorder %v1389_v46, 2 }
  0xeb   :  { %v3230_v24 = vmul.u32.u64.low %v3202_v7, %v1762_v29  ;;  %v3231_v58 = vmul.u32.u64.high %v3202_v7, %v1762_v29, %v3230_v24  ;;  %v3235_v51 = vmul.u32.u64.low %v3202_v7, %v1766_v44  ;;  %v3236_v33 = vmul.u32.u64.high %v3202_v7, %v1766_v44, %v3235_v51 }
  0xec   :  { %v1941_v50 = vadd.s32 1, %v2237_v12  ;;  %v1563_v19 = vadd.s32 %v3138_v62, %v3144_v14  ;;  %vm2220_vm4 = vcmp.lt.s32.totalorder %v2219_v9, 0  ;;  %v1758_v6 = vsel %vm1752_vm10, %v1755_v36, %v1757_v61 }
  0xed   :  { %v1931_v38 = vand.u32 2147483647, %v3165_v47  ;;  %v1578_v57 = vsel %vm2220_vm4, 0, %v2219_v9  ;;  %v1593_v17 = vsub.s32 4, %v3175_v55  ;;  %v1774_v14 = vmul.u32 %v3202_v7, %v1758_v6 }
  0xee   :  { %v2319_v3 = vpop.eup %2318  ;;  %vm1942_vm5 = vcmp.gt.s32.totalorder %v1941_v50, 0  ;;  %v1579_v2 = vsub.s32 32, %v1578_v57  ;;  %v1580_v40 = vshll.u32 %v3192_v20, %v1578_v57  ;;  %v1583_v31 = vsub.s32 4294967266, %v1578_v57 }
  0xef   :  { %v2321_v37 = vpop.eup %2320  ;;  %v1395_v0 = vxor.u32 2147483648, %v2319_v3  ;;  %vm1776_vm6 = vc.u32 %v3236_v33, %v3230_v24  ;;  %v1777_v20 = vadd.s32 1, %v3231_v58  ;;  %v1943_v49 = vsel %vm1942_vm5, %v1941_v50, 0 }
  0xf0   :  { %v1392_v52 = vxor.u32 2147483648, %v2321_v37  ;;  %v1581_v13 = vshrl.u32 %v1563_v19, %v1579_v2  ;;  %v1584_v5 = vadd.s32 127, %v1583_v31  ;;  %v1945_v46 = vand.u32 31, %v1943_v49 }
  0xf1   :  { %v1396_v4 = vsel %vm1394_vm2, %v1395_v0, %v2321_v37  ;;  %v1501_v62 = vsel %vm1499_vm15, %v1395_v0, %v2321_v37  ;;  %v1778_v48 = vsel %vm1776_vm6, %v1777_v20, %v3231_v58  ;;  %vm1509_vm7 = vcmp.lt.s32.totalorder %v2942_v15, 0 }
  0xf2   :  { %v1393_v23 = vsel %vm1391_vm3, %v2319_v3, %v1392_v52  ;;  %v1498_v56 = vsel %vm1496_vm13, %v2319_v3, %v1392_v52  ;;  %v1582_v35 = vor.u32 %v1581_v13, %v1580_v40  ;;  %v1585_v8 = vshll.u32 %v1584_v5, 23 }
  0xf3   :  { %v1397_v45 = vsel %vm1390_vm1, %v1393_v23, %v1396_v4  ;;  %v1502_v42 = vsel %vm1495_vm11, %v1498_v56, %v1501_v62  ;;  %v1779_v7 = vadd.s32 %v1778_v48, %v1774_v14  ;;  %v1594_v21 = vsel %vm1509_vm7, %v1593_v17, %v3175_v55 }
  0xf4   :  { %v1398_v18 = vsel %vm1387_vm14, nan, %v1397_v45  ;;  %v1503_v53 = vsel %vm1387_vm14, nan, %v1502_v42  ;;  %v1586_v54 = vor.u32 4788187, %v1585_v8  ;;  %v1589_v59 = vcvt.s32.f32 %v1582_v35 }
  0xf5   :  { %2211 = vst.msk [vmem:[%s3370_s1 + $0x34] sm:$0x7] %vm21_vm0, %v1398_v18  ;;  %2216 = vst.msk [vmem:[%s3370_s1 + $0x38] sm:$0x7] %vm21_vm0, %v1503_v53  ;;  %v1938_v60 = vand.u32 8388607, %v1931_v38  ;;  %v1948_v27 = vshll.u32 %v2359_v26, %v1945_v46  ;;  %v1951_v10 = vshll.u32 %v2360_v28, %v1945_v46  ;;  %v1954_v61 = vshll.u32 %v2361_v30, %v1945_v46 }
  0xf6   :  { %v1944_v22 = vshrl.u32 %v1943_v49, 5  ;;  %v1946_v63 = vsub.s32 32, %v1945_v46  ;;  %v1587_v43 = vand.u32 2147483647, %v1586_v54  ;;  %v1780_v1 = vadd.s32 536870912, %v1779_v7 }
  0xf7   :  { %v1957_v39 = vshll.u32 %v2362_v32, %v1945_v46  ;;  %vm1508_vm8 = vcmp.le.f32.partialorder %v1507_v25, 0.7853982  ;;  %v1960_v58 = vshll.u32 %v2363_v34, %v1945_v46  ;;  %v1939_v19 = vor.u32 8388608, %v1938_v60 }
  0xf8   :  { %v1949_v36 = vshrl.u32 %v2360_v28, %v1946_v63  ;;  %v1955_v29 = vshrl.u32 %v2362_v32, %v1946_v63  ;;  %v1590_v55 = vmul.f32 %v1589_v59, %v1587_v43  ;;  %v3284_v12 = vshrl.u32 %v1780_v1, 30 }
  0xf9   :  { %v1952_v9 = vshrl.u32 %v2361_v30, %v1946_v63  ;;  %v1958_v44 = vshrl.u32 %v2363_v34, %v1946_v63  ;;  %v1961_v28 = vshrl.u32 %v2364_v41, %v1946_v63  ;;  %v1596_v50 = vsel %vm1508_vm8, 0, %v1594_v21 }
  0xfa   :  { %v1591_v51 = vxor.u32 2147483648, %v1590_v55  ;;  %v1782_v3 = vshll.u32 %v3284_v12, 30  ;;  %v1947_v32 = vshrl.u32 %v2359_v26, %v1946_v63  ;;  %v1950_v6 = vor.u32 %v1949_v36, %v1948_v27 }
  0xfb   :  { %v1956_v37 = vor.u32 %v1955_v29, %v1954_v61  ;;  %v1959_v0 = vor.u32 %v1958_v44, %v1957_v39  ;;  %v1953_v25 = vor.u32 %v1952_v9, %v1951_v10  ;;  %vm1966_vm9 = vcmp.lt.s32.totalorder %v1944_v22, 4 }
  0xfc   :  { %v1592_v30 = vsel %vm1509_vm7, %v1591_v51, %v1590_v55  ;;  %v3296_v57 = vsub.s32 %v1779_v7, %v1782_v3  ;;  %v1962_v41 = vor.u32 %v1961_v28, %v1960_v58  ;;  %vm1963_vm12 = vcmp.lt.s32.totalorder %v1944_v22, 1 }
  0xfd   :  { %v1595_v34 = vsel %vm1508_vm8, %v2942_v15, %v1592_v30  ;;  %v1968_v17 = vsel %vm1966_vm9, %v1956_v37, 2102212464  ;;  %v1600_v52 = vadd.s32 3, %v1596_v50  ;;  %vm1965_vm13 = vcmp.lt.s32.totalorder %v1944_v22, 3 }
  0xfe   :  { %2322 = vcosq.f32 %v1595_v34  ;;  %v1785_v26 = vsub.s32 0, %v3296_v57  ;;  %vm1964_vm11 = vcmp.lt.s32.totalorder %v1944_v22, 2  ;;  %v1972_v2 = vsel %vm1966_vm9, %v1959_v0, 920167782 }
  0xff   :  { %2324 = vsinq.f32 %v1595_v34  ;;  %v1979_v40 = vshll.u32 %v1939_v19, 8  ;;  %v1967_v4 = vsel %vm1963_vm12, %v1947_v32, %v1950_v6  ;;  %v1969_v62 = vsel %vm1965_vm13, %v1953_v25, %v1968_v17 }
 0x100   :  { %v2228_v31 = vmin.u32 %v1785_v26, %v3296_v57  ;;  %v1971_v14 = vsel %vm1963_vm12, %v1950_v6, %v1953_v25  ;;  %v1973_v23 = vsel %vm1965_vm13, %v1956_v37, %v1972_v2  ;;  %v1975_v56 = vsel %vm1963_vm12, %v1953_v25, %v1956_v37 }
 0x101   :  { %v1976_v13 = vsel %vm1966_vm9, %v1962_v41, 1326507024  ;;  %v1706_v5 = vand.u32 3, %v1596_v50  ;;  %v1601_v42 = vand.u32 3, %v1600_v52  ;;  %v1970_v20 = vsel %vm1964_vm11, %v1967_v4, %v1969_v62 }
 0x102   :  { %v1787_v45 = vclz %v2228_v31  ;;  %v1974_v49 = vsel %vm1964_vm11, %v1971_v14, %v1973_v23  ;;  %v1977_v18 = vsel %vm1965_vm13, %v1959_v0, %v1976_v13  ;;  %v1775_v59 = vadd.s32 %v3230_v24, %v3236_v33 }
 0x103   :  { %v1978_v35 = vsel %vm1964_vm11, %v1975_v56, %v1977_v18  ;;  %v3310_v8 = vmul.u32.u64.low %v1979_v40, %v1974_v49  ;;  %v3311_v48 = vmul.u32.u64.high %v1979_v40, %v1974_v49, %v3310_v8  ;;  %vm1707_vm10 = vcmp.lt.s32.totalorder %v1706_v5, 2 }
 0x104   :  { %v2229_v53 = vadd.s32 4294967294, %v1787_v45  ;;  %v3314_v46 = vmul.u32.u64.low %v1979_v40, %v1978_v35  ;;  %v3315_v54 = vmul.u32.u64.high %v1979_v40, %v1978_v35, %v3314_v46  ;;  %vm1708_vm14 = vcmp.eq.s32.totalorder %v1706_v5, 0 }
 0x105   :  { %vm1606_vm1 = vcmp.eq.s32.totalorder %v1601_v42, 2  ;;  %vm1711_vm3 = vcmp.eq.s32.totalorder %v1706_v5, 2  ;;  %v1986_v21 = vmul.u32 %v1979_v40, %v1970_v20  ;;  %v1989_v1 = vadd.s32 1, %v3311_v48 }
 0x106   :  { %vm2230_vm15 = vcmp.lt.s32.totalorder %v2229_v53, 0  ;;  %vm1602_vm2 = vcmp.lt.s32.totalorder %v1601_v42, 2  ;;  %vm1603_vm4 = vcmp.eq.s32.totalorder %v1601_v42, 0  ;;  %vm1988_vm5 = vc.u32 %v3315_v54, %v3310_v8 }
 0x107   :  { %v1790_v7 = vsel %vm2230_vm15, 0, %v2229_v53  ;;  %v1990_v61 = vsel %vm1988_vm5, %v1989_v1, %v3311_v48  ;;  %vm1599_vm6 = vweird.f32 %v2942_v15  ;;  %v1805_v30 = vsub.s32 4, %v3284_v12 }
 0x108   :  { %v2323_v60 = vpop.eup %2322  ;;  %v1791_v22 = vsub.s32 32, %v1790_v7  ;;  %v1792_v63 = vshll.u32 %v3296_v57, %v1790_v7  ;;  %v1795_v43 = vsub.s32 4294967266, %v1790_v7  ;;  %v1991_v55 = vadd.s32 %v1990_v61, %v1986_v21 }
 0x109   :  { %v2325_v27 = vpop.eup %2324  ;;  %v1607_v10 = vxor.u32 2147483648, %v2323_v60  ;;  %vm1721_vm7 = vcmp.lt.s32.totalorder %v3016_v11, 0  ;;  %vm1720_vm8 = vcmp.le.f32.partialorder %v1719_v16, 0.7853982  ;;  %v1987_v23 = vadd.s32 %v3310_v8, %v3315_v54 }
 0x10a   :  { %v1604_v24 = vxor.u32 2147483648, %v2325_v27  ;;  %v1793_v33 = vshrl.u32 %v1775_v59, %v1791_v22  ;;  %v1796_v36 = vadd.s32 127, %v1795_v43  ;;  %v1992_v3 = vadd.s32 536870912, %v1991_v55 }
 0x10b   :  { %v1608_v29 = vsel %vm1606_vm1, %v1607_v10, %v2325_v27  ;;  %v1713_v39 = vsel %vm1711_vm3, %v1607_v10, %v2325_v27  ;;  %v1806_v17 = vsel %vm1721_vm7, %v1805_v30, %v3284_v12  ;;  %vm1933_vm3 = vcmp.lt.s32.totalorder %v3165_v47, 0 }
 0x10c   :  { %v1605_v9 = vsel %vm1603_vm4, %v2323_v60, %v1604_v24  ;;  %v1710_v44 = vsel %vm1708_vm14, %v2323_v60, %v1604_v24  ;;  %v1794_v58 = vor.u32 %v1793_v33, %v1792_v63  ;;  %v1797_v28 = vshll.u32 %v1796_v36, 23 }
 0x10d   :  { %v1609_v51 = vsel %vm1602_vm2, %v1605_v9, %v1608_v29  ;;  %v1714_v50 = vsel %vm1707_vm10, %v1710_v44, %v1713_v39  ;;  %v1993_v15 = vshrl.u32 %v1992_v3, 30  ;;  %v1808_v40 = vsel %vm1720_vm8, 0, %v1806_v17 }
 0x10e   :  { %v1610_v19 = vsel %vm1599_vm6, nan, %v1609_v51  ;;  %v1715_v32 = vsel %vm1599_vm6, nan, %v1714_v50  ;;  %v1798_v6 = vor.u32 4788187, %v1797_v28  ;;  %v1801_v37 = vcvt.s32.f32 %v1794_v58 }
 0x10f   :  { %2221 = vst.msk [vmem:[%s3370_s1 + $0x3c] sm:$0x7] %vm21_vm0, %v1610_v19  ;;  %2226 = vst.msk [vmem:[%s3370_s1 + $0x40] sm:$0x7] %vm21_vm0, %v1715_v32  ;;  %v1994_v57 = vshll.u32 %v1993_v15, 30  ;;  %v1812_v62 = vadd.s32 3, %v1808_v40  ;;  %vm1811_vm14 = vweird.f32 %v3016_v11 }
 0x110   :  { %v1799_v0 = vand.u32 2147483647, %v1798_v6  ;;  %v1918_v16 = vand.u32 3, %v1808_v40  ;;  %v2017_v1 = vsub.s32 4, %v1993_v15  ;;  %vm1932_vm2 = vcmp.le.f32.partialorder %v1931_v38, 0.7853982 }
 0x111   :  { %v1995_v34 = vsub.s32 %v1991_v55, %v1994_v57  ;;  %v1813_v56 = vand.u32 3, %v1812_v62 }
 0x112   :  { %v1802_v25 = vmul.f32 %v1801_v37, %v1799_v0  ;;  %vm1920_vm13 = vcmp.eq.s32.totalorder %v1918_v16, 0  ;;  %vm1923_vm11 = vcmp.eq.s32.totalorder %v1918_v16, 2  ;;  %vm1919_vm1 = vcmp.lt.s32.totalorder %v1918_v16, 2 }
 0x113   :  { %v1997_v52 = vsub.s32 0, %v1995_v34  ;;  %vm1818_vm12 = vcmp.eq.s32.totalorder %v1813_v56, 2  ;;  %vm1815_vm10 = vcmp.eq.s32.totalorder %v1813_v56, 0  ;;  %vm1814_vm15 = vcmp.lt.s32.totalorder %v1813_v56, 2 }
 0x114   :  { %v1803_v41 = vxor.u32 2147483648, %v1802_v25  ;;  %v2018_v33 = vsel %vm1933_vm3, %v2017_v1, %v1993_v15 }
 0x115   :  { %v2238_v31 = vmin.u32 %v1997_v52, %v1995_v34  ;;  %v2020_v29 = vsel %vm1932_vm2, 0, %v2018_v33 }
 0x116   :  { %v1804_v26 = vsel %vm1721_vm7, %v1803_v41, %v1802_v25  ;;  %v2024_v39 = vadd.s32 3, %v2020_v29  ;;  %v2130_v9 = vand.u32 3, %v2020_v29 }
 0x117   :  { %v1807_v2 = vsel %vm1720_vm8, %v3016_v11, %v1804_v26  ;;  %v1999_v4 = vclz %v2238_v31 }
 0x118   :  { %2326 = vcosq.f32 %v1807_v2  ;;  %v2025_v55 = vand.u32 3, %v2024_v39  ;;  %vm2135_vm5 = vcmp.eq.s32.totalorder %v2130_v9, 2  ;;  %vm2132_vm7 = vcmp.eq.s32.totalorder %v2130_v9, 0 }
 0x119   :  { %2328 = vsinq.f32 %v1807_v2  ;;  %v2239_v14 = vadd.s32 4294967294, %v1999_v4 }
 0x11a   :  { %vm2030_vm4 = vcmp.eq.s32.totalorder %v2025_v55, 2  ;;  %vm2027_vm6 = vcmp.eq.s32.totalorder %v2025_v55, 0  ;;  %vm2026_vm8 = vcmp.lt.s32.totalorder %v2025_v55, 2 }
 0x11b   :  { %vm2240_vm9 = vcmp.lt.s32.totalorder %v2239_v14, 0 }
 0x11c   :  { %v2002_v13 = vsel %vm2240_vm9, 0, %v2239_v14  ;;  %vm2131_vm9 = vcmp.lt.s32.totalorder %v2130_v9, 2 }
 0x11d   :  { %v2003_v5 = vsub.s32 32, %v2002_v13  ;;  %v2004_v12 = vshll.u32 %v1995_v34, %v2002_v13  ;;  %v2007_v45 = vsub.s32 4294967266, %v2002_v13 }
 0x11f   :  { %v2005_v42 = vshrl.u32 %v1987_v23, %v2003_v5  ;;  %v2008_v20 = vadd.s32 127, %v2007_v45 }
 0x121   :  { %v2006_v35 = vor.u32 %v2005_v42, %v2004_v12  ;;  %v2009_v48 = vshll.u32 %v2008_v20, 23 }
 0x122   :  { %v2327_v49 = vpop.eup %2326 }
 0x123   :  { %v2329_v18 = vpop.eup %2328  ;;  %v1819_v53 = vxor.u32 2147483648, %v2327_v49  ;;  %v2010_v59 = vor.u32 4788187, %v2009_v48  ;;  %v2013_v7 = vcvt.s32.f32 %v2006_v35 }
 0x124   :  { %v1816_v8 = vxor.u32 2147483648, %v2329_v18 }
 0x125   :  { %v1820_v46 = vsel %vm1818_vm12, %v1819_v53, %v2329_v18  ;;  %v1925_v54 = vsel %vm1923_vm11, %v1819_v53, %v2329_v18  ;;  %v2011_v43 = vand.u32 2147483647, %v2010_v59  ;;  %vm2023_vm12 = vweird.f32 %v3165_v47 }
 0x126   :  { %v1817_v21 = vsel %vm1815_vm10, %v2327_v49, %v1816_v8  ;;  %v1922_v60 = vsel %vm1920_vm13, %v2327_v49, %v1816_v8 }
 0x127   :  { %v1821_v22 = vsel %vm1814_vm15, %v1817_v21, %v1820_v46  ;;  %v1926_v63 = vsel %vm1919_vm1, %v1922_v60, %v1925_v54  ;;  %v2014_v11 = vmul.f32 %v2013_v7, %v2011_v43 }
 0x128   :  { %v1822_v27 = vsel %vm1811_vm14, nan, %v1821_v22  ;;  %v1927_v10 = vsel %vm1811_vm14, nan, %v1926_v63 }
 0x129   :  { %2231 = vst.msk [vmem:[%s3370_s1 + $0x44] sm:$0x7] %vm21_vm0, %v1822_v27  ;;  %2236 = vst.msk [vmem:[%s3370_s1 + $0x48] sm:$0x7] %vm21_vm0, %v1927_v10  ;;  %v2015_v24 = vxor.u32 2147483648, %v2014_v11 }
 0x12b   :  { %v2016_v36 = vsel %vm1933_vm3, %v2015_v24, %v2014_v11 }
 0x12c   :  { %v2019_v61 = vsel %vm1932_vm2, %v3165_v47, %v2016_v36 }
 0x12d   :  { %2330 = vcosq.f32 %v2019_v61 }
 0x12e   :  { %2332 = vsinq.f32 %v2019_v61 }
 0x137   :  { %v2331_v44 = vpop.eup %2330 }
 0x138   :  { %v2333_v58 = vpop.eup %2332  ;;  %v2031_v28 = vxor.u32 2147483648, %v2331_v44 }
 0x139   :  { %v2028_v38 = vxor.u32 2147483648, %v2333_v58 }
 0x13a   :  { %v2032_v51 = vsel %vm2030_vm4, %v2031_v28, %v2333_v58  ;;  %v2137_v50 = vsel %vm2135_vm5, %v2031_v28, %v2333_v58 }
 0x13b   :  { %v2029_v3 = vsel %vm2027_vm6, %v2331_v44, %v2028_v38  ;;  %v2134_v19 = vsel %vm2132_vm7, %v2331_v44, %v2028_v38 }
 0x13c   :  { %v2033_v32 = vsel %vm2026_vm8, %v2029_v3, %v2032_v51  ;;  %v2138_v6 = vsel %vm2131_vm9, %v2134_v19, %v2137_v50 }
 0x13d   :  { %v2034_v37 = vsel %vm2023_vm12, nan, %v2033_v32  ;;  %v2139_v15 = vsel %vm2023_vm12, nan, %v2138_v6 }
 0x13e   :  { %2241 = vst.msk [vmem:[%s3370_s1 + $0x4c] sm:$0x7] %vm21_vm0, %v2034_v37  ;;  %2246 = vst.msk [vmem:[%s3370_s1 + $0x50] sm:$0x7] %vm21_vm0, %v2139_v15 }
 0x13f   :  { %2146 = vsyncpa [#allocation3], 1 }

</bundles_post_ra>
